<compile_context>
chip_gen: v7x
topology: tpu7x:2x2x1
jax: 0.10.0
libtpu: 0.0.40
codegen_flags: <defaults>
</compile_context>

<pallas_src>
import math
import functools

import jax
import jax.numpy as jnp
from jax.experimental import pallas as pl
from jax.experimental.pallas import tpu as pltpu


_SUBLANES = 8                                  # f32 sublane count (channel pad granularity)
_VMEM_LIMIT_BYTES = 32 * 1024 * 1024           # explicit scoped-VMEM budget (safe on v5e/v6e/v7x)


def _cpad(c):
    return ((c + _SUBLANES - 1) // _SUBLANES) * _SUBLANES


def _compiler_params():
    return pltpu.CompilerParams(
        dimension_semantics=("parallel",),     # batch grid axis -> both TCs on v7x
        vmem_limit_bytes=_VMEM_LIMIT_BYTES,
    )


# ----------------------------- in-kernel math --------------------------------

def _erf(z):
    # Abramowitz & Stegun 7.1.26 rational approximation, |err| <= 1.5e-7
    # (float32-precision "exact" erf; avoids relying on a lax.erf lowering rule).
    a1, a2, a3, a4, a5 = 0.254829592, -0.284496736, 1.421413741, -1.453152027, 1.061405429
    p = 0.3275911
    az = jnp.abs(z)
    t = 1.0 / (1.0 + p * az)
    poly = ((((a5 * t + a4) * t + a3) * t + a2) * t + a1) * t
    y = 1.0 - poly * jnp.exp(-az * az)
    return jnp.where(z >= 0.0, y, -y)


def _gelu_exact(x):
    # matches torch.nn.GELU() default (erf formulation)
    return 0.5 * x * (1.0 + _erf(x * (1.0 / math.sqrt(2.0))))


def _im2col_flat(xp_ref, h, w):
    """Build the (9*Cpad, H*W) im2col matrix from the zero-padded flattened
    (Cpad, H*W + 2W + 2) VMEM scratch.  Row out-of-range taps land in the flat zero
    padding; column out-of-range taps are zeroed with a per-column edge mask.
    Every tap piece is a full (Cpad, H*W) tile-aligned slab, so the concat is cheap."""
    L = h * w
    cpad = xp_ref.shape[0]
    col = jax.lax.broadcasted_iota(jnp.int32, (cpad, L), 1) % w
    not_left = col != 0
    not_right = col != (w - 1)
    taps = []
    for dy in (-1, 0, 1):
        for dx in (-1, 0, 1):
            start = (w + 1) + dy * w + dx          # static offset into the flat pad
            p = xp_ref[:, start:start + L]
            if dx == -1:
                p = jnp.where(not_left, p, 0.0)
            elif dx == 1:
                p = jnp.where(not_right, p, 0.0)
            taps.append(p)
    return jnp.concatenate(taps, axis=0)            # (9*cpad, L)


def _conv_bias(xp_ref, w_ref, b_ref, h, w, mm_dtype):
    # single im2col matmul: (Cout, 9*Cpad) x (9*Cpad, H*W) -> (Cout, H*W), f32 accumulate
    pat = _im2col_flat(xp_ref, h, w).astype(mm_dtype)
    return jnp.dot(w_ref[...].astype(mm_dtype), pat,
                   preferred_element_type=jnp.float32) + b_ref[...]


# ------------------------------- Pallas kernels --------------------------------

def _conv1_kernel(h, w, cin, mm_dtype,
                  x_ref, w_ref, b_ref,
                  conv_ref, sum_ref, ssq_ref,
                  xp_ref):
    L = h * w
    # in-kernel zero "same" padding (flattened layout); also zeroes channel-pad rows
    xp_ref[...] = jnp.zeros_like(xp_ref)
    xp_ref[:cin, w + 1:w + 1 + L] = x_ref[0]
    conv = _conv_bias(xp_ref, w_ref, b_ref, h, w, mm_dtype)      # (cout, L), lane-dense
    conv_ref[0] = conv
    # BN partial statistics (single pass: sum and sum-of-squares, lane reduce on XLU)
    sum_ref[0] = jnp.sum(conv, axis=1, keepdims=True)
    ssq_ref[0] = jnp.sum(conv * conv, axis=1, keepdims=True)


def _bn_gelu_conv2_kernel(h, w, cmid, mm_dtype,
                          conv1_ref, sc_ref, sh_ref, w_ref, b_ref,
                          x1_ref, conv2_ref, sum_ref, ssq_ref,
                          xp_ref):
    L = h * w
    # folded BN1 (one FMA) + exact GELU -> x1 (computed in-kernel; x1 never read back for conv2)
    x1 = _gelu_exact(conv1_ref[0] * sc_ref[...] + sh_ref[...])
    x1_ref[0] = x1
    xp_ref[...] = jnp.zeros_like(xp_ref)
    xp_ref[:cmid, w + 1:w + 1 + L] = x1
    conv = _conv_bias(xp_ref, w_ref, b_ref, h, w, mm_dtype)
    conv2_ref[0] = conv
    sum_ref[0] = jnp.sum(conv, axis=1, keepdims=True)
    ssq_ref[0] = jnp.sum(conv * conv, axis=1, keepdims=True)


def _bn_gelu_residual_kernel(conv2_ref, x1_ref, sc_ref, sh_ref, out_ref):
    x2 = _gelu_exact(conv2_ref[0] * sc_ref[...] + sh_ref[...])   # folded BN2 + GELU
    out_ref[0] = (x1_ref[0] + x2) / 1.414                         # literal 1.414, as in the module


# ------------------------------ pallas_call wrappers ----------------------------

def _conv1_call(x_flat, w_slab, bias, h, w, mm_dtype):
    n, cin, L = x_flat.shape
    cout = w_slab.shape[0]
    cpad = _cpad(cin)
    kern = functools.partial(_conv1_kernel, h, w, cin, mm_dtype)
    return pl.pallas_call(
        kern,
        grid=(n,),
        in_specs=[
            pl.BlockSpec((1, cin, L), lambda i: (i, 0, 0)),
            pl.BlockSpec((cout, 9 * cpad), lambda i: (0, 0)),
            pl.BlockSpec((cout, 1), lambda i: (0, 0)),
        ],
        out_specs=(
            pl.BlockSpec((1, cout, L), lambda i: (i, 0, 0)),      # conv1 (lane-dense)
            pl.BlockSpec((1, cout, 1), lambda i: (i, 0, 0)),      # per-tile sum
            pl.BlockSpec((1, cout, 1), lambda i: (i, 0, 0)),      # per-tile sumsq
        ),
        out_shape=(
            jax.ShapeDtypeStruct((n, cout, L), jnp.float32),
            jax.ShapeDtypeStruct((n, cout, 1), jnp.float32),
            jax.ShapeDtypeStruct((n, cout, 1), jnp.float32),
        ),
        scratch_shapes=[pltpu.VMEM((cpad, L + 2 * w + 2), jnp.float32)],
        compiler_params=_compiler_params(),
    )(x_flat, w_slab, bias)


def _bn_gelu_conv2_call(conv1, scale1, shift1, w_slab, bias, h, w, mm_dtype):
    n, cmid, L = conv1.shape
    cout = w_slab.shape[0]
    cpad = _cpad(cmid)
    kern = functools.partial(_bn_gelu_conv2_kernel, h, w, cmid, mm_dtype)
    return pl.pallas_call(
        kern,
        grid=(n,),
        in_specs=[
            pl.BlockSpec((1, cmid, L), lambda i: (i, 0, 0)),
            pl.BlockSpec((cmid, 1), lambda i: (0, 0)),
            pl.BlockSpec((cmid, 1), lambda i: (0, 0)),
            pl.BlockSpec((cout, 9 * cpad), lambda i: (0, 0)),
            pl.BlockSpec((cout, 1), lambda i: (0, 0)),
        ],
        out_specs=(
            pl.BlockSpec((1, cmid, L), lambda i: (i, 0, 0)),      # x1 (for the residual)
            pl.BlockSpec((1, cout, L), lambda i: (i, 0, 0)),      # conv2
            pl.BlockSpec((1, cout, 1), lambda i: (i, 0, 0)),
            pl.BlockSpec((1, cout, 1), lambda i: (i, 0, 0)),
        ),
        out_shape=(
            jax.ShapeDtypeStruct((n, cmid, L), jnp.float32),
            jax.ShapeDtypeStruct((n, cout, L), jnp.float32),
            jax.ShapeDtypeStruct((n, cout, 1), jnp.float32),
            jax.ShapeDtypeStruct((n, cout, 1), jnp.float32),
        ),
        scratch_shapes=[pltpu.VMEM((cpad, L + 2 * w + 2), jnp.float32)],
        compiler_params=_compiler_params(),
    )(conv1, scale1, shift1, w_slab, bias)


def _bn_gelu_residual_call(conv2, x1, scale2, shift2):
    n, cout, L = conv2.shape
    return pl.pallas_call(
        _bn_gelu_residual_kernel,
        grid=(n,),
        in_specs=[
            pl.BlockSpec((1, cout, L), lambda i: (i, 0, 0)),
            pl.BlockSpec((1, cout, L), lambda i: (i, 0, 0)),
            pl.BlockSpec((cout, 1), lambda i: (0, 0)),
            pl.BlockSpec((cout, 1), lambda i: (0, 0)),
        ],
        out_specs=pl.BlockSpec((1, cout, L), lambda i: (i, 0, 0)),
        out_shape=jax.ShapeDtypeStruct((n, cout, L), jnp.float32),
        compiler_params=_compiler_params(),
    )(conv2, x1, scale2, shift2)


# ------------------------------ host-side glue ---------------------------------

def _weight_slab(w_oihw, cpad):
    """OIHW conv weight -> aligned (Cout, 9*Cin_pad) im2col slab (tap-major, cin-minor)."""
    cout, cin, kh, kw = w_oihw.shape
    w = jnp.transpose(w_oihw, (0, 2, 3, 1))                       # (cout, kh, kw, cin)
    w = jnp.pad(w, ((0, 0), (0, 0), (0, 0), (0, cpad - cin)))     # zero-pad cin to sublane mult
    return w.reshape(cout, kh * kw * cpad).astype(jnp.float32)


def _bn_fold(sums, sumsqs, gamma, beta, count):
    """Fold per-tile BN partial sums into a single (scale, shift) FMA. O(C) work."""
    s = jnp.sum(sums, axis=0)                                     # (C, 1)
    q = jnp.sum(sumsqs, axis=0)
    mean = s / count
    var = jnp.maximum(q / count - mean * mean, 0.0)
    scale = gamma.reshape(-1, 1).astype(jnp.float32) * jax.lax.rsqrt(var + 1e-5)
    shift = beta.reshape(-1, 1).astype(jnp.float32) - mean * scale
    return scale, shift


# ------------------------------ module wrapper ----------------------------------

def residual_conv_block(x_nchw, params, matmul_dtype=jnp.float32):
    """Forward of ResidualConvBlock. Input/Output are NCHW (PyTorch convention)."""
    n, cin, h, w = x_nchw.shape
    cout = params["w1"].shape[0]
    L = h * w
    x_flat = x_nchw.reshape(n, cin, L).astype(jnp.float32)        # free reshape (contiguous)

    w1 = _weight_slab(params["w1"], _cpad(cin))
    w2 = _weight_slab(params["w2"], _cpad(cout))
    b1 = params["b1"].reshape(cout, 1).astype(jnp.float32)
    b2 = params["b2"].reshape(cout, 1).astype(jnp.float32)

    # layer 1: conv + bias (+ BN1 partial stats)
    conv1, s1, q1 = _conv1_call(x_flat, w1, b1, h, w, matmul_dtype)
    scale1, shift1 = _bn_fold(s1, q1, params["g1"], params["be1"], n * L)

    # BN1 + GELU fused with layer-2 conv (+ BN2 partial stats); x1 kept for the residual
    x1, conv2, s2, q2 = _bn_gelu_conv2_call(conv1, scale1, shift1, w2, b2, h, w, matmul_dtype)
    scale2, shift2 = _bn_fold(s2, q2, params["g2"], params["be2"], n * L)

    # BN2 + GELU + residual add + /1.414
    out = _bn_gelu_residual_call(conv2, x1, scale2, shift2)
    return out.reshape(n, cout, h, w)                             # flattened NCHW -> NCHW


# ------------------------------ pure-JAX reference ------------------------------

def _reference(x_nchw, params):
    def block(x, w, b, g, be):
        y = jax.lax.conv_general_dilated(
            x, w, window_strides=(1, 1), padding="SAME",
            dimension_numbers=("NCHW", "OIHW", "NCHW")) + b[None, :, None, None]
        mean = jnp.mean(y, axis=(0, 2, 3), keepdims=True)
        var = jnp.mean((y - mean) ** 2, axis=(0, 2, 3), keepdims=True)
        yhat = (y - mean) * jax.lax.rsqrt(var + 1e-5)
        y = yhat * g[None, :, None, None] + be[None, :, None, None]
        return jax.nn.gelu(y, approximate=False)

    x1 = block(x_nchw, params["w1"], params["b1"], params["g1"], params["be1"])
    x2 = block(x1, params["w2"], params["b2"], params["g2"], params["be2"])
    return (x1 + x2) / 1.414


# ----------------------------------- main ----------------------------------------

if __name__ == "__main__":
    N, C_IN, C_OUT, H, W = 2, 4, 8, 16, 16

    key = jax.random.PRNGKey(0)
    ks = jax.random.split(key, 9)
    params = {
        "w1": 0.1 * jax.random.normal(ks[0], (C_OUT, C_IN, 3, 3), jnp.float32),
        "b1": 0.1 * jax.random.normal(ks[1], (C_OUT,), jnp.float32),
        "g1": 1.0 + 0.1 * jax.random.normal(ks[2], (C_OUT,), jnp.float32),
        "be1": 0.1 * jax.random.normal(ks[3], (C_OUT,), jnp.float32),
        "w2": 0.1 * jax.random.normal(ks[4], (C_OUT, C_OUT, 3, 3), jnp.float32),
        "b2": 0.1 * jax.random.normal(ks[5], (C_OUT,), jnp.float32),
        "g2": 1.0 + 0.1 * jax.random.normal(ks[6], (C_OUT,), jnp.float32),
        "be2": 0.1 * jax.random.normal(ks[7], (C_OUT,), jnp.float32),
    }
    x = jax.random.normal(ks[8], (N, C_IN, H, W), jnp.float32)

    ref = _reference(x, params)

    # f32 matmul path (exact), tight tolerance
    fwd_f32 = jax.jit(lambda xx, pp: residual_conv_block(xx, pp, jnp.float32))
    out = jax.block_until_ready(fwd_f32(x, params))
    max_err = float(jnp.max(jnp.abs(out - ref)))
    if not (out.shape == (N, C_OUT, H, W) and max_err < 1e-3):
        raise AssertionError(f"f32 path mismatch: shape={out.shape}, max_err={max_err}")

    # bf16-operand / f32-accumulate MXU path (v6e/v7x optimization), looser tolerance
    fwd_bf16 = jax.jit(lambda xx, pp: residual_conv_block(xx, pp, jnp.bfloat16))
    out_bf16 = jax.block_until_ready(fwd_bf16(x, params))
    max_err_bf16 = float(jnp.max(jnp.abs(out_bf16 - ref)))
    if not (out_bf16.shape == (N, C_OUT, H, W) and max_err_bf16 < 5e-2):
        raise AssertionError(f"bf16 path mismatch: max_err={max_err_bf16}")

    print("KERNEL_OK")
</pallas_src>

<mosaic_0001>
module attributes {stable_mosaic.version = 11 : i64} {
  func.func @_conv1_kernel(%arg0: i32, %arg1: memref<1x4x256xf32, #tpu.memory_space<vmem>>, %arg2: memref<8x72xf32, #tpu.memory_space<vmem>>, %arg3: memref<8x1xf32, #tpu.memory_space<vmem>>, %arg4: memref<1x8x256xf32, #tpu.memory_space<vmem>>, %arg5: memref<1x8x1xf32, #tpu.memory_space<vmem>>, %arg6: memref<1x8x1xf32, #tpu.memory_space<vmem>>, %arg7: memref<8x290xf32, #tpu.memory_space<vmem>>) attributes {dimension_semantics = [#tpu.dimension_semantics<parallel>], iteration_bounds = array<i64: 2>, scalar_prefetch = 0 : i64, scratch_operands = 1 : i64, tpu.core_type = #tpu.core_type<tc>, window_params = [{transform_indices = @transform_0, window_bounds = array<i64: 1, 4, 256>}, {pipeline_mode = #tpu.pipeline_mode<synchronous>, transform_indices = @transform_1, window_bounds = array<i64: 8, 72>}, {pipeline_mode = #tpu.pipeline_mode<synchronous>, transform_indices = @transform_2, window_bounds = array<i64: 8, 1>}, {transform_indices = @transform_3, window_bounds = array<i64: 1, 8, 256>}, {transform_indices = @transform_4, window_bounds = array<i64: 1, 8, 1>}, {transform_indices = @transform_5, window_bounds = array<i64: 1, 8, 1>}]} {
    %cst = arith.constant 0.000000e+00 : f32
    %0 = vector.broadcast %cst : f32 to vector<8x290xf32>
    %c0 = arith.constant 0 : index
    %c0_0 = arith.constant 0 : index
    %1 = vector.load %arg7[%c0, %c0_0] : memref<8x290xf32, #tpu.memory_space<vmem>>, vector<8x290xf32>
    tpu.vector_store %arg7[%c0, %c0_0], %0 {strides = array<i32>} : memref<8x290xf32, #tpu.memory_space<vmem>>, vector<8x290xf32>,
    %c0_1 = arith.constant 0 : index
    %c0_2 = arith.constant 0 : index
    %c0_3 = arith.constant 0 : index
    %2 = vector.load %arg1[%c0_1, %c0_2, %c0_3] : memref<1x4x256xf32, #tpu.memory_space<vmem>>, vector<1x4x256xf32>
    %3 = vector.shape_cast %2 : vector<1x4x256xf32> to vector<4x256xf32>
    %c0_4 = arith.constant 0 : index
    %c17 = arith.constant 17 : index
    %4 = vector.load %arg7[%c0_4, %c17] : memref<8x290xf32, #tpu.memory_space<vmem>>, vector<4x256xf32>
    tpu.vector_store %arg7[%c0_4, %c17], %3 {strides = array<i32>} : memref<8x290xf32, #tpu.memory_space<vmem>>, vector<4x256xf32>,
    %5 = tpu.iota {dimensions = array<i32: 1>} : vector<8x256xi32>
    %c16_i32 = arith.constant 16 : i32
    %c0_i32 = arith.constant 0 : i32
    %6 = arith.cmpi eq, %c16_i32, %c0_i32 : i32
    %c1_i32 = arith.constant 1 : i32
    %7 = arith.select %6, %c1_i32, %c16_i32 : i32
    %8 = vector.broadcast %7 : i32 to vector<8x256xi32>
    %9 = arith.remsi %5, %8 : vector<8x256xi32>
    %c0_i32_5 = arith.constant 0 : i32
    %10 = vector.broadcast %c0_i32_5 : i32 to vector<8x256xi32>
    %11 = arith.cmpi ne, %9, %10 : vector<8x256xi32>
    %c0_i32_6 = arith.constant 0 : i32
    %12 = vector.broadcast %c0_i32_6 : i32 to vector<8x256xi32>
    %13 = arith.cmpi slt, %9, %12 : vector<8x256xi32>
    %c0_i32_7 = arith.constant 0 : i32
    %14 = arith.cmpi slt, %7, %c0_i32_7 : i32
    %15 = vector.broadcast %14 : i1 to vector<8x256xi1>
    %16 = vector.broadcast %15 : vector<8x256xi1> to vector<8x256xi1>
    %17 = arith.xori %13, %16 : vector<8x256xi1>
    %18 = arith.andi %17, %11 : vector<8x256xi1>
    %19 = vector.broadcast %7 : i32 to vector<8x256xi32>
    %20 = arith.addi %9, %19 : vector<8x256xi32>
    %21 = arith.select %18, %20, %9 : vector<8x256xi1>, vector<8x256xi32>
    %c0_i32_8 = arith.constant 0 : i32
    %22 = vector.broadcast %c0_i32_8 : i32 to vector<8x256xi32>
    %23 = arith.cmpi ne, %21, %22 : vector<8x256xi32>
    %c15_i32 = arith.constant 15 : i32
    %24 = vector.broadcast %c15_i32 : i32 to vector<8x256xi32>
    %25 = arith.cmpi ne, %21, %24 : vector<8x256xi32>
    %c0_9 = arith.constant 0 : index
    %c0_10 = arith.constant 0 : index
    %26 = vector.load %arg7[%c0_9, %c0_10] : memref<8x290xf32, #tpu.memory_space<vmem>>, vector<8x256xf32>
    %cst_11 = arith.constant 0.000000e+00 : f32
    %27 = vector.broadcast %cst_11 : f32 to vector<8x256xf32>
    %28 = arith.select %23, %26, %27 : vector<8x256xi1>, vector<8x256xf32>
    %c0_12 = arith.constant 0 : index
    %c1 = arith.constant 1 : index
    %29 = vector.load %arg7[%c0_12, %c1] : memref<8x290xf32, #tpu.memory_space<vmem>>, vector<8x256xf32>
    %c0_13 = arith.constant 0 : index
    %c2 = arith.constant 2 : index
    %30 = vector.load %arg7[%c0_13, %c2] : memref<8x290xf32, #tpu.memory_space<vmem>>, vector<8x256xf32>
    %cst_14 = arith.constant 0.000000e+00 : f32
    %31 = vector.broadcast %cst_14 : f32 to vector<8x256xf32>
    %32 = arith.select %25, %30, %31 : vector<8x256xi1>, vector<8x256xf32>
    %c0_15 = arith.constant 0 : index
    %c16 = arith.constant 16 : index
    %33 = vector.load %arg7[%c0_15, %c16] : memref<8x290xf32, #tpu.memory_space<vmem>>, vector<8x256xf32>
    %cst_16 = arith.constant 0.000000e+00 : f32
    %34 = vector.broadcast %cst_16 : f32 to vector<8x256xf32>
    %35 = arith.select %23, %33, %34 : vector<8x256xi1>, vector<8x256xf32>
    %c0_17 = arith.constant 0 : index
    %c17_18 = arith.constant 17 : index
    %36 = vector.load %arg7[%c0_17, %c17_18] : memref<8x290xf32, #tpu.memory_space<vmem>>, vector<8x256xf32>
    %c0_19 = arith.constant 0 : index
    %c18 = arith.constant 18 : index
    %37 = vector.load %arg7[%c0_19, %c18] : memref<8x290xf32, #tpu.memory_space<vmem>>, vector<8x256xf32>
    %cst_20 = arith.constant 0.000000e+00 : f32
    %38 = vector.broadcast %cst_20 : f32 to vector<8x256xf32>
    %39 = arith.select %25, %37, %38 : vector<8x256xi1>, vector<8x256xf32>
    %c0_21 = arith.constant 0 : index
    %c32 = arith.constant 32 : index
    %40 = vector.load %arg7[%c0_21, %c32] : memref<8x290xf32, #tpu.memory_space<vmem>>, vector<8x256xf32>
    %cst_22 = arith.constant 0.000000e+00 : f32
    %41 = vector.broadcast %cst_22 : f32 to vector<8x256xf32>
    %42 = arith.select %23, %40, %41 : vector<8x256xi1>, vector<8x256xf32>
    %c0_23 = arith.constant 0 : index
    %c33 = arith.constant 33 : index
    %43 = vector.load %arg7[%c0_23, %c33] : memref<8x290xf32, #tpu.memory_space<vmem>>, vector<8x256xf32>
    %c0_24 = arith.constant 0 : index
    %c34 = arith.constant 34 : index
    %44 = vector.load %arg7[%c0_24, %c34] : memref<8x290xf32, #tpu.memory_space<vmem>>, vector<8x256xf32>
    %cst_25 = arith.constant 0.000000e+00 : f32
    %45 = vector.broadcast %cst_25 : f32 to vector<8x256xf32>
    %46 = arith.select %25, %44, %45 : vector<8x256xi1>, vector<8x256xf32>
    %47 = tpu.concatenate %28, %29, %32, %35, %36, %39, %42, %43, %46 in 0 : vector<8x256xf32>, vector<8x256xf32>, vector<8x256xf32>, vector<8x256xf32>, vector<8x256xf32>, vector<8x256xf32>, vector<8x256xf32>, vector<8x256xf32>, vector<8x256xf32> -> vector<72x256xf32>
    %c0_26 = arith.constant 0 : index
    %c0_27 = arith.constant 0 : index
    %48 = vector.load %arg2[%c0_26, %c0_27] : memref<8x72xf32, #tpu.memory_space<vmem>>, vector<8x72xf32>
    %cst_28 = arith.constant dense<0.000000e+00> : vector<8x256xf32>
    %49 = tpu.matmul %48, %47, %cst_28 {dimension_numbers = #tpu.dot_dimension_numbers<[1], [0], [0], [1], [0, 0, 1, 1], [], []>} : vector<8x72xf32>, vector<72x256xf32>, vector<8x256xf32> -> vector<8x256xf32>
    %c0_29 = arith.constant 0 : index
    %c0_30 = arith.constant 0 : index
    %50 = vector.load %arg3[%c0_29, %c0_30] : memref<8x1xf32, #tpu.memory_space<vmem>>, vector<8x1xf32>
    %51 = vector.broadcast %50 : vector<8x1xf32> to vector<8x256xf32>
    %52 = arith.addf %49, %51 : vector<8x256xf32>
    %c0_31 = arith.constant 0 : index
    %c0_32 = arith.constant 0 : index
    %c0_33 = arith.constant 0 : index
    %53 = vector.load %arg4[%c0_31, %c0_32, %c0_33] : memref<1x8x256xf32, #tpu.memory_space<vmem>>, vector<1x8x256xf32>
    %54 = vector.shape_cast %53 : vector<1x8x256xf32> to vector<8x256xf32>
    %55 = vector.shape_cast %52 : vector<8x256xf32> to vector<1x8x256xf32>
    tpu.vector_store %arg4[%c0_31, %c0_32, %c0_33], %55 {strides = array<i32>} : memref<1x8x256xf32, #tpu.memory_space<vmem>>, vector<1x8x256xf32>,
    %cst_34 = arith.constant dense<0.000000e+00> : vector<8xf32>
    %56 = vector.multi_reduction <add>, %52, %cst_34 [1] : vector<8x256xf32> to vector<8xf32>
    %57 = vector.shape_cast %56 : vector<8xf32> to vector<8x1xf32>
    %c0_35 = arith.constant 0 : index
    %c0_36 = arith.constant 0 : index
    %c0_37 = arith.constant 0 : index
    %58 = vector.load %arg5[%c0_35, %c0_36, %c0_37] : memref<1x8x1xf32, #tpu.memory_space<vmem>>, vector<1x8x1xf32>
    %59 = vector.shape_cast %58 : vector<1x8x1xf32> to vector<8x1xf32>
    %60 = vector.shape_cast %57 : vector<8x1xf32> to vector<1x8x1xf32>
    tpu.vector_store %arg5[%c0_35, %c0_36, %c0_37], %60 {strides = array<i32>} : memref<1x8x1xf32, #tpu.memory_space<vmem>>, vector<1x8x1xf32>,
    %61 = arith.mulf %52, %52 : vector<8x256xf32>
    %cst_38 = arith.constant dense<0.000000e+00> : vector<8xf32>
    %62 = vector.multi_reduction <add>, %61, %cst_38 [1] : vector<8x256xf32> to vector<8xf32>
    %63 = vector.shape_cast %62 : vector<8xf32> to vector<8x1xf32>
    %c0_39 = arith.constant 0 : index
    %c0_40 = arith.constant 0 : index
    %c0_41 = arith.constant 0 : index
    %64 = vector.load %arg6[%c0_39, %c0_40, %c0_41] : memref<1x8x1xf32, #tpu.memory_space<vmem>>, vector<1x8x1xf32>
    %65 = vector.shape_cast %64 : vector<1x8x1xf32> to vector<8x1xf32>
    %66 = vector.shape_cast %63 : vector<8x1xf32> to vector<1x8x1xf32>
    tpu.vector_store %arg6[%c0_39, %c0_40, %c0_41], %66 {strides = array<i32>} : memref<1x8x1xf32, #tpu.memory_space<vmem>>, vector<1x8x1xf32>,
    return
  }
  func.func @transform_0(%arg0: i32) -> (i32, i32, i32) {
    %c0_i32 = arith.constant 0 : i32
    %c0_i32_0 = arith.constant 0 : i32
    %c0_i32_1 = arith.constant 0 : i32
    return %arg0, %c0_i32, %c0_i32_0 : i32, i32, i32
  }
  func.func @transform_1(%arg0: i32) -> (i32, i32) {
    %c0_i32 = arith.constant 0 : i32
    %c0_i32_0 = arith.constant 0 : i32
    %c0_i32_1 = arith.constant 0 : i32
    return %c0_i32, %c0_i32_0 : i32, i32
  }
  func.func @transform_2(%arg0: i32) -> (i32, i32) {
    %c0_i32 = arith.constant 0 : i32
    %c0_i32_0 = arith.constant 0 : i32
    %c0_i32_1 = arith.constant 0 : i32
    return %c0_i32, %c0_i32_0 : i32, i32
  }
  func.func @transform_3(%arg0: i32) -> (i32, i32, i32) {
    %c0_i32 = arith.constant 0 : i32
    %c0_i32_0 = arith.constant 0 : i32
    %c0_i32_1 = arith.constant 0 : i32
    return %arg0, %c0_i32, %c0_i32_0 : i32, i32, i32
  }
  func.func @transform_4(%arg0: i32) -> (i32, i32, i32) {
    %c0_i32 = arith.constant 0 : i32
    %c0_i32_0 = arith.constant 0 : i32
    %c0_i32_1 = arith.constant 0 : i32
    return %arg0, %c0_i32, %c0_i32_0 : i32, i32, i32
  }
  func.func @transform_5(%arg0: i32) -> (i32, i32, i32) {
    %c0_i32 = arith.constant 0 : i32
    %c0_i32_0 = arith.constant 0 : i32
    %c0_i32_1 = arith.constant 0 : i32
    return %arg0, %c0_i32, %c0_i32_0 : i32, i32, i32
  }
}

module attributes {stable_mosaic.version = 11 : i64} {
  func.func @_bn_gelu_conv2_kernel(%arg0: i32, %arg1: memref<1x8x256xf32, #tpu.memory_space<vmem>>, %arg2: memref<8x1xf32, #tpu.memory_space<vmem>>, %arg3: memref<8x1xf32, #tpu.memory_space<vmem>>, %arg4: memref<8x72xf32, #tpu.memory_space<vmem>>, %arg5: memref<8x1xf32, #tpu.memory_space<vmem>>, %arg6: memref<1x8x256xf32, #tpu.memory_space<vmem>>, %arg7: memref<1x8x256xf32, #tpu.memory_space<vmem>>, %arg8: memref<1x8x1xf32, #tpu.memory_space<vmem>>, %arg9: memref<1x8x1xf32, #tpu.memory_space<vmem>>, %arg10: memref<8x290xf32, #tpu.memory_space<vmem>>) attributes {dimension_semantics = [#tpu.dimension_semantics<parallel>], iteration_bounds = array<i64: 2>, scalar_prefetch = 0 : i64, scratch_operands = 1 : i64, tpu.core_type = #tpu.core_type<tc>, window_params = [{transform_indices = @transform_0, window_bounds = array<i64: 1, 8, 256>}, {pipeline_mode = #tpu.pipeline_mode<synchronous>, transform_indices = @transform_1, window_bounds = array<i64: 8, 1>}, {pipeline_mode = #tpu.pipeline_mode<synchronous>, transform_indices = @transform_2, window_bounds = array<i64: 8, 1>}, {pipeline_mode = #tpu.pipeline_mode<synchronous>, transform_indices = @transform_3, window_bounds = array<i64: 8, 72>}, {pipeline_mode = #tpu.pipeline_mode<synchronous>, transform_indices = @transform_4, window_bounds = array<i64: 8, 1>}, {transform_indices = @transform_5, window_bounds = array<i64: 1, 8, 256>}, {transform_indices = @transform_6, window_bounds = array<i64: 1, 8, 256>}, {transform_indices = @transform_7, window_bounds = array<i64: 1, 8, 1>}, {transform_indices = @transform_8, window_bounds = array<i64: 1, 8, 1>}]} {
    %c0 = arith.constant 0 : index
    %c0_0 = arith.constant 0 : index
    %c0_1 = arith.constant 0 : index
    %0 = vector.load %arg1[%c0, %c0_0, %c0_1] : memref<1x8x256xf32, #tpu.memory_space<vmem>>, vector<1x8x256xf32>
    %1 = vector.shape_cast %0 : vector<1x8x256xf32> to vector<8x256xf32>
    %c0_2 = arith.constant 0 : index
    %c0_3 = arith.constant 0 : index
    %2 = vector.load %arg2[%c0_2, %c0_3] : memref<8x1xf32, #tpu.memory_space<vmem>>, vector<8x1xf32>
    %3 = vector.broadcast %2 : vector<8x1xf32> to vector<8x256xf32>
    %4 = arith.mulf %1, %3 : vector<8x256xf32>
    %c0_4 = arith.constant 0 : index
    %c0_5 = arith.constant 0 : index
    %5 = vector.load %arg3[%c0_4, %c0_5] : memref<8x1xf32, #tpu.memory_space<vmem>>, vector<8x1xf32>
    %6 = vector.broadcast %5 : vector<8x1xf32> to vector<8x256xf32>
    %7 = arith.addf %4, %6 : vector<8x256xf32>
    %cst = arith.constant 5.000000e-01 : f32
    %8 = vector.broadcast %cst : f32 to vector<8x256xf32>
    %9 = arith.mulf %8, %7 : vector<8x256xf32>
    %cst_6 = arith.constant 0.707106769 : f32
    %10 = vector.broadcast %cst_6 : f32 to vector<8x256xf32>
    %11 = arith.mulf %7, %10 : vector<8x256xf32>
    %12 = math.absf %11 : vector<8x256xf32>
    %cst_7 = arith.constant 0.327591091 : f32
    %13 = vector.broadcast %cst_7 : f32 to vector<8x256xf32>
    %14 = arith.mulf %13, %12 : vector<8x256xf32>
    %cst_8 = arith.constant 1.000000e+00 : f32
    %15 = vector.broadcast %cst_8 : f32 to vector<8x256xf32>
    %16 = arith.addf %15, %14 : vector<8x256xf32>
    %cst_9 = arith.constant 1.000000e+00 : f32
    %17 = vector.broadcast %cst_9 : f32 to vector<8x256xf32>
    %18 = arith.divf %17, %16 : vector<8x256xf32>
    %cst_10 = arith.constant 1.06140542 : f32
    %19 = vector.broadcast %cst_10 : f32 to vector<8x256xf32>
    %20 = arith.mulf %19, %18 : vector<8x256xf32>
    %cst_11 = arith.constant -1.45315206 : f32
    %21 = vector.broadcast %cst_11 : f32 to vector<8x256xf32>
    %22 = arith.addf %20, %21 : vector<8x256xf32>
    %23 = arith.mulf %22, %18 : vector<8x256xf32>
    %cst_12 = arith.constant 1.42141378 : f32
    %24 = vector.broadcast %cst_12 : f32 to vector<8x256xf32>
    %25 = arith.addf %23, %24 : vector<8x256xf32>
    %26 = arith.mulf %25, %18 : vector<8x256xf32>
    %cst_13 = arith.constant -0.284496725 : f32
    %27 = vector.broadcast %cst_13 : f32 to vector<8x256xf32>
    %28 = arith.addf %26, %27 : vector<8x256xf32>
    %29 = arith.mulf %28, %18 : vector<8x256xf32>
    %cst_14 = arith.constant 0.254829586 : f32
    %30 = vector.broadcast %cst_14 : f32 to vector<8x256xf32>
    %31 = arith.addf %29, %30 : vector<8x256xf32>
    %32 = arith.mulf %31, %18 : vector<8x256xf32>
    %cst_15 = arith.constant 0.000000e+00 : f32
    %33 = vector.broadcast %cst_15 : f32 to vector<8x256xf32>
    %34 = arith.subf %33, %12 : vector<8x256xf32>
    %35 = arith.mulf %34, %12 : vector<8x256xf32>
    %36 = math.exp %35 : vector<8x256xf32>
    %37 = arith.mulf %32, %36 : vector<8x256xf32>
    %cst_16 = arith.constant 1.000000e+00 : f32
    %38 = vector.broadcast %cst_16 : f32 to vector<8x256xf32>
    %39 = arith.subf %38, %37 : vector<8x256xf32>
    %cst_17 = arith.constant 0.000000e+00 : f32
    %40 = vector.broadcast %cst_17 : f32 to vector<8x256xf32>
    %41 = arith.cmpf oge, %11, %40 : vector<8x256xf32>
    %cst_18 = arith.constant 0.000000e+00 : f32
    %42 = vector.broadcast %cst_18 : f32 to vector<8x256xf32>
    %43 = arith.subf %42, %39 : vector<8x256xf32>
    %44 = arith.select %41, %39, %43 : vector<8x256xi1>, vector<8x256xf32>
    %cst_19 = arith.constant 1.000000e+00 : f32
    %45 = vector.broadcast %cst_19 : f32 to vector<8x256xf32>
    %46 = arith.addf %45, %44 : vector<8x256xf32>
    %47 = arith.mulf %9, %46 : vector<8x256xf32>
    %c0_20 = arith.constant 0 : index
    %c0_21 = arith.constant 0 : index
    %c0_22 = arith.constant 0 : index
    %48 = vector.load %arg6[%c0_20, %c0_21, %c0_22] : memref<1x8x256xf32, #tpu.memory_space<vmem>>, vector<1x8x256xf32>
    %49 = vector.shape_cast %48 : vector<1x8x256xf32> to vector<8x256xf32>
    %50 = vector.shape_cast %47 : vector<8x256xf32> to vector<1x8x256xf32>
    tpu.vector_store %arg6[%c0_20, %c0_21, %c0_22], %50 {strides = array<i32>} : memref<1x8x256xf32, #tpu.memory_space<vmem>>, vector<1x8x256xf32>,
    %cst_23 = arith.constant 0.000000e+00 : f32
    %51 = vector.broadcast %cst_23 : f32 to vector<8x290xf32>
    %c0_24 = arith.constant 0 : index
    %c0_25 = arith.constant 0 : index
    %52 = vector.load %arg10[%c0_24, %c0_25] : memref<8x290xf32, #tpu.memory_space<vmem>>, vector<8x290xf32>
    tpu.vector_store %arg10[%c0_24, %c0_25], %51 {strides = array<i32>} : memref<8x290xf32, #tpu.memory_space<vmem>>, vector<8x290xf32>,
    %c0_26 = arith.constant 0 : index
    %c17 = arith.constant 17 : index
    %53 = vector.load %arg10[%c0_26, %c17] : memref<8x290xf32, #tpu.memory_space<vmem>>, vector<8x256xf32>
    tpu.vector_store %arg10[%c0_26, %c17], %47 {strides = array<i32>} : memref<8x290xf32, #tpu.memory_space<vmem>>, vector<8x256xf32>,
    %54 = tpu.iota {dimensions = array<i32: 1>} : vector<8x256xi32>
    %c16_i32 = arith.constant 16 : i32
    %c0_i32 = arith.constant 0 : i32
    %55 = arith.cmpi eq, %c16_i32, %c0_i32 : i32
    %c1_i32 = arith.constant 1 : i32
    %56 = arith.select %55, %c1_i32, %c16_i32 : i32
    %57 = vector.broadcast %56 : i32 to vector<8x256xi32>
    %58 = arith.remsi %54, %57 : vector<8x256xi32>
    %c0_i32_27 = arith.constant 0 : i32
    %59 = vector.broadcast %c0_i32_27 : i32 to vector<8x256xi32>
    %60 = arith.cmpi ne, %58, %59 : vector<8x256xi32>
    %c0_i32_28 = arith.constant 0 : i32
    %61 = vector.broadcast %c0_i32_28 : i32 to vector<8x256xi32>
    %62 = arith.cmpi slt, %58, %61 : vector<8x256xi32>
    %c0_i32_29 = arith.constant 0 : i32
    %63 = arith.cmpi slt, %56, %c0_i32_29 : i32
    %64 = vector.broadcast %63 : i1 to vector<8x256xi1>
    %65 = vector.broadcast %64 : vector<8x256xi1> to vector<8x256xi1>
    %66 = arith.xori %62, %65 : vector<8x256xi1>
    %67 = arith.andi %66, %60 : vector<8x256xi1>
    %68 = vector.broadcast %56 : i32 to vector<8x256xi32>
    %69 = arith.addi %58, %68 : vector<8x256xi32>
    %70 = arith.select %67, %69, %58 : vector<8x256xi1>, vector<8x256xi32>
    %c0_i32_30 = arith.constant 0 : i32
    %71 = vector.broadcast %c0_i32_30 : i32 to vector<8x256xi32>
    %72 = arith.cmpi ne, %70, %71 : vector<8x256xi32>
    %c15_i32 = arith.constant 15 : i32
    %73 = vector.broadcast %c15_i32 : i32 to vector<8x256xi32>
    %74 = arith.cmpi ne, %70, %73 : vector<8x256xi32>
    %c0_31 = arith.constant 0 : index
    %c0_32 = arith.constant 0 : index
    %75 = vector.load %arg10[%c0_31, %c0_32] : memref<8x290xf32, #tpu.memory_space<vmem>>, vector<8x256xf32>
    %cst_33 = arith.constant 0.000000e+00 : f32
    %76 = vector.broadcast %cst_33 : f32 to vector<8x256xf32>
    %77 = arith.select %72, %75, %76 : vector<8x256xi1>, vector<8x256xf32>
    %c0_34 = arith.constant 0 : index
    %c1 = arith.constant 1 : index
    %78 = vector.load %arg10[%c0_34, %c1] : memref<8x290xf32, #tpu.memory_space<vmem>>, vector<8x256xf32>
    %c0_35 = arith.constant 0 : index
    %c2 = arith.constant 2 : index
    %79 = vector.load %arg10[%c0_35, %c2] : memref<8x290xf32, #tpu.memory_space<vmem>>, vector<8x256xf32>
    %cst_36 = arith.constant 0.000000e+00 : f32
    %80 = vector.broadcast %cst_36 : f32 to vector<8x256xf32>
    %81 = arith.select %74, %79, %80 : vector<8x256xi1>, vector<8x256xf32>
    %c0_37 = arith.constant 0 : index
    %c16 = arith.constant 16 : index
    %82 = vector.load %arg10[%c0_37, %c16] : memref<8x290xf32, #tpu.memory_space<vmem>>, vector<8x256xf32>
    %cst_38 = arith.constant 0.000000e+00 : f32
    %83 = vector.broadcast %cst_38 : f32 to vector<8x256xf32>
    %84 = arith.select %72, %82, %83 : vector<8x256xi1>, vector<8x256xf32>
    %c0_39 = arith.constant 0 : index
    %c17_40 = arith.constant 17 : index
    %85 = vector.load %arg10[%c0_39, %c17_40] : memref<8x290xf32, #tpu.memory_space<vmem>>, vector<8x256xf32>
    %c0_41 = arith.constant 0 : index
    %c18 = arith.constant 18 : index
    %86 = vector.load %arg10[%c0_41, %c18] : memref<8x290xf32, #tpu.memory_space<vmem>>, vector<8x256xf32>
    %cst_42 = arith.constant 0.000000e+00 : f32
    %87 = vector.broadcast %cst_42 : f32 to vector<8x256xf32>
    %88 = arith.select %74, %86, %87 : vector<8x256xi1>, vector<8x256xf32>
    %c0_43 = arith.constant 0 : index
    %c32 = arith.constant 32 : index
    %89 = vector.load %arg10[%c0_43, %c32] : memref<8x290xf32, #tpu.memory_space<vmem>>, vector<8x256xf32>
    %cst_44 = arith.constant 0.000000e+00 : f32
    %90 = vector.broadcast %cst_44 : f32 to vector<8x256xf32>
    %91 = arith.select %72, %89, %90 : vector<8x256xi1>, vector<8x256xf32>
    %c0_45 = arith.constant 0 : index
    %c33 = arith.constant 33 : index
    %92 = vector.load %arg10[%c0_45, %c33] : memref<8x290xf32, #tpu.memory_space<vmem>>, vector<8x256xf32>
    %c0_46 = arith.constant 0 : index
    %c34 = arith.constant 34 : index
    %93 = vector.load %arg10[%c0_46, %c34] : memref<8x290xf32, #tpu.memory_space<vmem>>, vector<8x256xf32>
    %cst_47 = arith.constant 0.000000e+00 : f32
    %94 = vector.broadcast %cst_47 : f32 to vector<8x256xf32>
    %95 = arith.select %74, %93, %94 : vector<8x256xi1>, vector<8x256xf32>
    %96 = tpu.concatenate %77, %78, %81, %84, %85, %88, %91, %92, %95 in 0 : vector<8x256xf32>, vector<8x256xf32>, vector<8x256xf32>, vector<8x256xf32>, vector<8x256xf32>, vector<8x256xf32>, vector<8x256xf32>, vector<8x256xf32>, vector<8x256xf32> -> vector<72x256xf32>
    %c0_48 = arith.constant 0 : index
    %c0_49 = arith.constant 0 : index
    %97 = vector.load %arg4[%c0_48, %c0_49] : memref<8x72xf32, #tpu.memory_space<vmem>>, vector<8x72xf32>
    %cst_50 = arith.constant dense<0.000000e+00> : vector<8x256xf32>
    %98 = tpu.matmul %97, %96, %cst_50 {dimension_numbers = #tpu.dot_dimension_numbers<[1], [0], [0], [1], [0, 0, 1, 1], [], []>} : vector<8x72xf32>, vector<72x256xf32>, vector<8x256xf32> -> vector<8x256xf32>
    %c0_51 = arith.constant 0 : index
    %c0_52 = arith.constant 0 : index
    %99 = vector.load %arg5[%c0_51, %c0_52] : memref<8x1xf32, #tpu.memory_space<vmem>>, vector<8x1xf32>
    %100 = vector.broadcast %99 : vector<8x1xf32> to vector<8x256xf32>
    %101 = arith.addf %98, %100 : vector<8x256xf32>
    %c0_53 = arith.constant 0 : index
    %c0_54 = arith.constant 0 : index
    %c0_55 = arith.constant 0 : index
    %102 = vector.load %arg7[%c0_53, %c0_54, %c0_55] : memref<1x8x256xf32, #tpu.memory_space<vmem>>, vector<1x8x256xf32>
    %103 = vector.shape_cast %102 : vector<1x8x256xf32> to vector<8x256xf32>
    %104 = vector.shape_cast %101 : vector<8x256xf32> to vector<1x8x256xf32>
    tpu.vector_store %arg7[%c0_53, %c0_54, %c0_55], %104 {strides = array<i32>} : memref<1x8x256xf32, #tpu.memory_space<vmem>>, vector<1x8x256xf32>,
    %cst_56 = arith.constant dense<0.000000e+00> : vector<8xf32>
    %105 = vector.multi_reduction <add>, %101, %cst_56 [1] : vector<8x256xf32> to vector<8xf32>
    %106 = vector.shape_cast %105 : vector<8xf32> to vector<8x1xf32>
    %c0_57 = arith.constant 0 : index
    %c0_58 = arith.constant 0 : index
    %c0_59 = arith.constant 0 : index
    %107 = vector.load %arg8[%c0_57, %c0_58, %c0_59] : memref<1x8x1xf32, #tpu.memory_space<vmem>>, vector<1x8x1xf32>
    %108 = vector.shape_cast %107 : vector<1x8x1xf32> to vector<8x1xf32>
    %109 = vector.shape_cast %106 : vector<8x1xf32> to vector<1x8x1xf32>
    tpu.vector_store %arg8[%c0_57, %c0_58, %c0_59], %109 {strides = array<i32>} : memref<1x8x1xf32, #tpu.memory_space<vmem>>, vector<1x8x1xf32>,
    %110 = arith.mulf %101, %101 : vector<8x256xf32>
    %cst_60 = arith.constant dense<0.000000e+00> : vector<8xf32>
    %111 = vector.multi_reduction <add>, %110, %cst_60 [1] : vector<8x256xf32> to vector<8xf32>
    %112 = vector.shape_cast %111 : vector<8xf32> to vector<8x1xf32>
    %c0_61 = arith.constant 0 : index
    %c0_62 = arith.constant 0 : index
    %c0_63 = arith.constant 0 : index
    %113 = vector.load %arg9[%c0_61, %c0_62, %c0_63] : memref<1x8x1xf32, #tpu.memory_space<vmem>>, vector<1x8x1xf32>
    %114 = vector.shape_cast %113 : vector<1x8x1xf32> to vector<8x1xf32>
    %115 = vector.shape_cast %112 : vector<8x1xf32> to vector<1x8x1xf32>
    tpu.vector_store %arg9[%c0_61, %c0_62, %c0_63], %115 {strides = array<i32>} : memref<1x8x1xf32, #tpu.memory_space<vmem>>, vector<1x8x1xf32>,
    return
  }
  func.func @transform_0(%arg0: i32) -> (i32, i32, i32) {
    %c0_i32 = arith.constant 0 : i32
    %c0_i32_0 = arith.constant 0 : i32
    %c0_i32_1 = arith.constant 0 : i32
    return %arg0, %c0_i32, %c0_i32_0 : i32, i32, i32
  }
  func.func @transform_1(%arg0: i32) -> (i32, i32) {
    %c0_i32 = arith.constant 0 : i32
    %c0_i32_0 = arith.constant 0 : i32
    %c0_i32_1 = arith.constant 0 : i32
    return %c0_i32, %c0_i32_0 : i32, i32
  }
  func.func @transform_2(%arg0: i32) -> (i32, i32) {
    %c0_i32 = arith.constant 0 : i32
    %c0_i32_0 = arith.constant 0 : i32
    %c0_i32_1 = arith.constant 0 : i32
    return %c0_i32, %c0_i32_0 : i32, i32
  }
  func.func @transform_3(%arg0: i32) -> (i32, i32) {
    %c0_i32 = arith.constant 0 : i32
    %c0_i32_0 = arith.constant 0 : i32
    %c0_i32_1 = arith.constant 0 : i32
    return %c0_i32, %c0_i32_0 : i32, i32
  }
  func.func @transform_4(%arg0: i32) -> (i32, i32) {
    %c0_i32 = arith.constant 0 : i32
    %c0_i32_0 = arith.constant 0 : i32
    %c0_i32_1 = arith.constant 0 : i32
    return %c0_i32, %c0_i32_0 : i32, i32
  }
  func.func @transform_5(%arg0: i32) -> (i32, i32, i32) {
    %c0_i32 = arith.constant 0 : i32
    %c0_i32_0 = arith.constant 0 : i32
    %c0_i32_1 = arith.constant 0 : i32
    return %arg0, %c0_i32, %c0_i32_0 : i32, i32, i32
  }
  func.func @transform_6(%arg0: i32) -> (i32, i32, i32) {
    %c0_i32 = arith.constant 0 : i32
    %c0_i32_0 = arith.constant 0 : i32
    %c0_i32_1 = arith.constant 0 : i32
    return %arg0, %c0_i32, %c0_i32_0 : i32, i32, i32
  }
  func.func @transform_7(%arg0: i32) -> (i32, i32, i32) {
    %c0_i32 = arith.constant 0 : i32
    %c0_i32_0 = arith.constant 0 : i32
    %c0_i32_1 = arith.constant 0 : i32
    return %arg0, %c0_i32, %c0_i32_0 : i32, i32, i32
  }
  func.func @transform_8(%arg0: i32) -> (i32, i32, i32) {
    %c0_i32 = arith.constant 0 : i32
    %c0_i32_0 = arith.constant 0 : i32
    %c0_i32_1 = arith.constant 0 : i32
    return %arg0, %c0_i32, %c0_i32_0 : i32, i32, i32
  }
}

module attributes {stable_mosaic.version = 11 : i64} {
  func.func @_bn_gelu_residual_kernel(%arg0: i32, %arg1: memref<1x8x256xf32, #tpu.memory_space<vmem>>, %arg2: memref<1x8x256xf32, #tpu.memory_space<vmem>>, %arg3: memref<8x1xf32, #tpu.memory_space<vmem>>, %arg4: memref<8x1xf32, #tpu.memory_space<vmem>>, %arg5: memref<1x8x256xf32, #tpu.memory_space<vmem>>) attributes {dimension_semantics = [#tpu.dimension_semantics<parallel>], iteration_bounds = array<i64: 2>, scalar_prefetch = 0 : i64, scratch_operands = 0 : i64, tpu.core_type = #tpu.core_type<tc>, window_params = [{transform_indices = @transform_0, window_bounds = array<i64: 1, 8, 256>}, {transform_indices = @transform_1, window_bounds = array<i64: 1, 8, 256>}, {pipeline_mode = #tpu.pipeline_mode<synchronous>, transform_indices = @transform_2, window_bounds = array<i64: 8, 1>}, {pipeline_mode = #tpu.pipeline_mode<synchronous>, transform_indices = @transform_3, window_bounds = array<i64: 8, 1>}, {transform_indices = @transform_4, window_bounds = array<i64: 1, 8, 256>}]} {
    %c0 = arith.constant 0 : index
    %c0_0 = arith.constant 0 : index
    %c0_1 = arith.constant 0 : index
    %0 = vector.load %arg1[%c0, %c0_0, %c0_1] : memref<1x8x256xf32, #tpu.memory_space<vmem>>, vector<1x8x256xf32>
    %1 = vector.shape_cast %0 : vector<1x8x256xf32> to vector<8x256xf32>
    %c0_2 = arith.constant 0 : index
    %c0_3 = arith.constant 0 : index
    %2 = vector.load %arg3[%c0_2, %c0_3] : memref<8x1xf32, #tpu.memory_space<vmem>>, vector<8x1xf32>
    %3 = vector.broadcast %2 : vector<8x1xf32> to vector<8x256xf32>
    %4 = arith.mulf %1, %3 : vector<8x256xf32>
    %c0_4 = arith.constant 0 : index
    %c0_5 = arith.constant 0 : index
    %5 = vector.load %arg4[%c0_4, %c0_5] : memref<8x1xf32, #tpu.memory_space<vmem>>, vector<8x1xf32>
    %6 = vector.broadcast %5 : vector<8x1xf32> to vector<8x256xf32>
    %7 = arith.addf %4, %6 : vector<8x256xf32>
    %cst = arith.constant 5.000000e-01 : f32
    %8 = vector.broadcast %cst : f32 to vector<8x256xf32>
    %9 = arith.mulf %8, %7 : vector<8x256xf32>
    %cst_6 = arith.constant 0.707106769 : f32
    %10 = vector.broadcast %cst_6 : f32 to vector<8x256xf32>
    %11 = arith.mulf %7, %10 : vector<8x256xf32>
    %12 = math.absf %11 : vector<8x256xf32>
    %cst_7 = arith.constant 0.327591091 : f32
    %13 = vector.broadcast %cst_7 : f32 to vector<8x256xf32>
    %14 = arith.mulf %13, %12 : vector<8x256xf32>
    %cst_8 = arith.constant 1.000000e+00 : f32
    %15 = vector.broadcast %cst_8 : f32 to vector<8x256xf32>
    %16 = arith.addf %15, %14 : vector<8x256xf32>
    %cst_9 = arith.constant 1.000000e+00 : f32
    %17 = vector.broadcast %cst_9 : f32 to vector<8x256xf32>
    %18 = arith.divf %17, %16 : vector<8x256xf32>
    %cst_10 = arith.constant 1.06140542 : f32
    %19 = vector.broadcast %cst_10 : f32 to vector<8x256xf32>
    %20 = arith.mulf %19, %18 : vector<8x256xf32>
    %cst_11 = arith.constant -1.45315206 : f32
    %21 = vector.broadcast %cst_11 : f32 to vector<8x256xf32>
    %22 = arith.addf %20, %21 : vector<8x256xf32>
    %23 = arith.mulf %22, %18 : vector<8x256xf32>
    %cst_12 = arith.constant 1.42141378 : f32
    %24 = vector.broadcast %cst_12 : f32 to vector<8x256xf32>
    %25 = arith.addf %23, %24 : vector<8x256xf32>
    %26 = arith.mulf %25, %18 : vector<8x256xf32>
    %cst_13 = arith.constant -0.284496725 : f32
    %27 = vector.broadcast %cst_13 : f32 to vector<8x256xf32>
    %28 = arith.addf %26, %27 : vector<8x256xf32>
    %29 = arith.mulf %28, %18 : vector<8x256xf32>
    %cst_14 = arith.constant 0.254829586 : f32
    %30 = vector.broadcast %cst_14 : f32 to vector<8x256xf32>
    %31 = arith.addf %29, %30 : vector<8x256xf32>
    %32 = arith.mulf %31, %18 : vector<8x256xf32>
    %cst_15 = arith.constant 0.000000e+00 : f32
    %33 = vector.broadcast %cst_15 : f32 to vector<8x256xf32>
    %34 = arith.subf %33, %12 : vector<8x256xf32>
    %35 = arith.mulf %34, %12 : vector<8x256xf32>
    %36 = math.exp %35 : vector<8x256xf32>
    %37 = arith.mulf %32, %36 : vector<8x256xf32>
    %cst_16 = arith.constant 1.000000e+00 : f32
    %38 = vector.broadcast %cst_16 : f32 to vector<8x256xf32>
    %39 = arith.subf %38, %37 : vector<8x256xf32>
    %cst_17 = arith.constant 0.000000e+00 : f32
    %40 = vector.broadcast %cst_17 : f32 to vector<8x256xf32>
    %41 = arith.cmpf oge, %11, %40 : vector<8x256xf32>
    %cst_18 = arith.constant 0.000000e+00 : f32
    %42 = vector.broadcast %cst_18 : f32 to vector<8x256xf32>
    %43 = arith.subf %42, %39 : vector<8x256xf32>
    %44 = arith.select %41, %39, %43 : vector<8x256xi1>, vector<8x256xf32>
    %cst_19 = arith.constant 1.000000e+00 : f32
    %45 = vector.broadcast %cst_19 : f32 to vector<8x256xf32>
    %46 = arith.addf %45, %44 : vector<8x256xf32>
    %47 = arith.mulf %9, %46 : vector<8x256xf32>
    %c0_20 = arith.constant 0 : index
    %c0_21 = arith.constant 0 : index
    %c0_22 = arith.constant 0 : index
    %48 = vector.load %arg2[%c0_20, %c0_21, %c0_22] : memref<1x8x256xf32, #tpu.memory_space<vmem>>, vector<1x8x256xf32>
    %49 = vector.shape_cast %48 : vector<1x8x256xf32> to vector<8x256xf32>
    %50 = arith.addf %49, %47 : vector<8x256xf32>
    %cst_23 = arith.constant 1.414000e+00 : f32
    %51 = vector.broadcast %cst_23 : f32 to vector<8x256xf32>
    %52 = arith.divf %50, %51 : vector<8x256xf32>
    %c0_24 = arith.constant 0 : index
    %c0_25 = arith.constant 0 : index
    %c0_26 = arith.constant 0 : index
    %53 = vector.load %arg5[%c0_24, %c0_25, %c0_26] : memref<1x8x256xf32, #tpu.memory_space<vmem>>, vector<1x8x256xf32>
    %54 = vector.shape_cast %53 : vector<1x8x256xf32> to vector<8x256xf32>
    %55 = vector.shape_cast %52 : vector<8x256xf32> to vector<1x8x256xf32>
    tpu.vector_store %arg5[%c0_24, %c0_25, %c0_26], %55 {strides = array<i32>} : memref<1x8x256xf32, #tpu.memory_space<vmem>>, vector<1x8x256xf32>,
    return
  }
  func.func @transform_0(%arg0: i32) -> (i32, i32, i32) {
    %c0_i32 = arith.constant 0 : i32
    %c0_i32_0 = arith.constant 0 : i32
    %c0_i32_1 = arith.constant 0 : i32
    return %arg0, %c0_i32, %c0_i32_0 : i32, i32, i32
  }
  func.func @transform_1(%arg0: i32) -> (i32, i32, i32) {
    %c0_i32 = arith.constant 0 : i32
    %c0_i32_0 = arith.constant 0 : i32
    %c0_i32_1 = arith.constant 0 : i32
    return %arg0, %c0_i32, %c0_i32_0 : i32, i32, i32
  }
  func.func @transform_2(%arg0: i32) -> (i32, i32) {
    %c0_i32 = arith.constant 0 : i32
    %c0_i32_0 = arith.constant 0 : i32
    %c0_i32_1 = arith.constant 0 : i32
    return %c0_i32, %c0_i32_0 : i32, i32
  }
  func.func @transform_3(%arg0: i32) -> (i32, i32) {
    %c0_i32 = arith.constant 0 : i32
    %c0_i32_0 = arith.constant 0 : i32
    %c0_i32_1 = arith.constant 0 : i32
    return %c0_i32, %c0_i32_0 : i32, i32
  }
  func.func @transform_4(%arg0: i32) -> (i32, i32, i32) {
    %c0_i32 = arith.constant 0 : i32
    %c0_i32_0 = arith.constant 0 : i32
    %c0_i32_1 = arith.constant 0 : i32
    return %arg0, %c0_i32, %c0_i32_0 : i32, i32, i32
  }
}

</mosaic_0001>

<bundles_post_ra>
// kernel: _lambda_.5
= control target key start
LH: loop header
LB: loop body
LE: loop exit
PB: predicated region body
PF: predicated region fallthrough
CT: control target
= control target key end

     0   :  { %s434_s15 = smov 0   ;;  %s465_s0 = inlined_call_operand.vmem [shape: f32[2,8,256], index: 0, kind: input, shape index: {}]   ;;  %s466_s1 = inlined_call_operand.vmem [shape: f32[2,8,256], index: 1, kind: input, shape index: {}]   ;;  %s467_s2 = inlined_call_operand.vmem [shape: f32[8,1], index: 2, kind: input, shape index: {}]   ;;  %s468_s3 = inlined_call_operand.vmem [shape: f32[8,1], index: 3, kind: input, shape index: {}]   ;;  %s469_s4 = inlined_call_operand.vmem [shape: f32[2,8,256], index: 4, kind: output, shape index: {}]  }
   0x1 LB: > { %s366_s16 = sadd.s32 4294967295, %s406_s15   ;;  %p370_p0 = scmp.ge.s32.totalorder %s406_s15, 1  ;;  %s406_s15 = sphi %s434_s15, %s14_s15  }
   0x2   : > { %p172_p1 = scmp.lt.s32.totalorder %s406_s15, 3 }
   0x4   : > { %p173_p2 = pnand %p370_p0, %p172_p1 }
   0x5   : > { %v220_v0 = vld [vmem:[%s467_s2] sm:$0xff] (!%p173_p2)  ;;  %v408_v1 = vmov (!%p173_p2), 0   ;;  %p203_p3 = scmp.lt.s32.totalorder (!%p173_p2), %s366_s16, 1 }
   0x6   : > { %176 = sbr.rel (%p173_p2) target bundleno = 195 (0xc3), region = 36  ;;  %391 = vset.pattern.permute.xlu0 (!%p173_p2), %v408_v1  ;;  %v228_v2 = vld [vmem:[%s468_s3] sm:$0xff] (!%p173_p2) }
   0x7   : > { %223 = vperm.xlu0 (!%p173_p2), %391, %v220_v0  }
   0xb   : > { %231 = vperm.xlu0 (!%p173_p2), %391, %v228_v2  }
   0xd   : > { %s471_s16 = smov (!%p203_p3, %s366_s16), 1 }
   0xe   : > { %s448_s21 = sshll.u32 %s471_s16, 4 }
   0xf   : > { %s207_s24 = scalar_lea.vmem %s465_s0, %s448_s21  ;;  %s212_s27 = scalar_lea.vmem %s466_s1, %s448_s21 }
  0x10   : > { %v218_v4 = vld [vmem:[%s207_s24] sm:$0xff]  ;;  %v219_v5 = vld [vmem:[%s207_s24 + $0x8] sm:$0xff]  ;;  %s217_s30 = scalar_lea.vmem %s469_s4, %s448_s21 }
  0x11   : > { %v290_v59 = vld [vmem:[%s212_s27] sm:$0xff]  ;;  %v291_v61 = vld [vmem:[%s212_s27 + $0x8] sm:$0xff] }
  0x86   : > { %v224_v3 = vpop.permute.xlu0 %223 }
  0x87   : > { %v226_v6 = vmul.f32 %v224_v3, %v218_v4  ;;  %v227_v7 = vmul.f32 %v224_v3, %v219_v5 }
  0x8a   : > { %v232_v8 = vpop.permute.xlu0 %231 }
  0x8b   : > { %v234_v9 = vadd.f32 %v232_v8, %v226_v6  ;;  %v235_v10 = vadd.f32 %v232_v8, %v227_v7 }
  0x8d   : > { %v238_v11 = vmul.f32 0.70710677, %v234_v9  ;;  %v239_v12 = vmul.f32 0.70710677, %v235_v10  ;;  %v236_v54 = vmul.f32 0.5, %v234_v9  ;;  %v237_v57 = vmul.f32 0.5, %v235_v10 }
  0x8f   : > { %v240_v13 = vand.u32 2147483647, %v238_v11  ;;  %v241_v14 = vand.u32 2147483647, %v239_v12  ;;  %vm280_vm0 = vcmp.ge.f32.partialorder %v238_v11, 0.0  ;;  %vm281_vm1 = vcmp.ge.f32.partialorder %v239_v12, 0.0 }
  0x91   : > { %v242_v15 = vmul.f32 0.3275911, %v240_v13  ;;  %v243_v16 = vmul.f32 0.3275911, %v241_v14  ;;  %v268_v19 = vsub.f32 0.0, %v240_v13  ;;  %v269_v20 = vsub.f32 0.0, %v241_v14 }
  0x93   : > { %v244_v17 = vadd.f32 1.0, %v242_v15  ;;  %v245_v18 = vadd.f32 1.0, %v243_v16  ;;  %v270_v22 = vmul.f32 %v268_v19, %v240_v13  ;;  %v271_v25 = vmul.f32 %v269_v20, %v241_v14 }
  0x95   : > { %392 = vrcp.f32 %v244_v17  ;;  %v272_v29 = vmul.f32 1.442695, %v270_v22  ;;  %v274_v31 = vmul.f32 1.442695, %v271_v25 }
  0x96   : > { %394 = vrcp.f32 %v245_v18 }
  0x97   : > { %396 = vpow2.f32 %v272_v29 }
  0x98   : > { %398 = vpow2.f32 %v274_v31 }
  0x9f   : > { %v393_v21 = vpop.eup %392 }
  0xa0   : > { %v395_v23 = vpop.eup %394  ;;  %v250_v24 = vmul.f32 1.0614054, %v393_v21 }
  0xa1   : > { %v251_v26 = vmul.f32 1.0614054, %v395_v23  ;;  %v397_v44 = vpop.eup %396 }
  0xa2   : > { %v252_v27 = vadd.f32 -1.4531521, %v250_v24  ;;  %v399_v46 = vpop.eup %398 }
  0xa3   : > { %v253_v28 = vadd.f32 -1.4531521, %v251_v26 }
  0xa4   : > { %v254_v30 = vmul.f32 %v393_v21, %v252_v27 }
  0xa5   : > { %v255_v32 = vmul.f32 %v395_v23, %v253_v28 }
  0xa6   : > { %v256_v33 = vadd.f32 1.4214138, %v254_v30 }
  0xa7   : > { %v257_v34 = vadd.f32 1.4214138, %v255_v32 }
  0xa8   : > { %v258_v35 = vmul.f32 %v393_v21, %v256_v33 }
  0xa9   : > { %v259_v36 = vmul.f32 %v395_v23, %v257_v34 }
  0xaa   : > { %v260_v37 = vadd.f32 -0.28449672, %v258_v35 }
  0xab   : > { %v261_v38 = vadd.f32 -0.28449672, %v259_v36 }
  0xac   : > { %v262_v39 = vmul.f32 %v393_v21, %v260_v37 }
  0xad   : > { %v263_v40 = vmul.f32 %v395_v23, %v261_v38 }
  0xae   : > { %v264_v41 = vadd.f32 0.2548296, %v262_v39 }
  0xaf   : > { %v265_v42 = vadd.f32 0.2548296, %v263_v40 }
  0xb0   : > { %v266_v43 = vmul.f32 %v393_v21, %v264_v41 }
  0xb1   : > { %v267_v45 = vmul.f32 %v395_v23, %v265_v42 }
  0xb2   : > { %v276_v47 = vmul.f32 %v397_v44, %v266_v43 }
  0xb3   : > { %v277_v48 = vmul.f32 %v399_v46, %v267_v45 }
  0xb4   : > { %v278_v49 = vsub.f32 1.0, %v276_v47 }
  0xb5   : > { %v279_v50 = vsub.f32 1.0, %v277_v48 }
  0xb6   : > { %v282_v51 = vsub.f32 0.0, %v278_v49 }
  0xb7   : > { %v283_v52 = vsub.f32 0.0, %v279_v50 }
  0xb8   : > { %v284_v53 = vsel %vm280_vm0, %v278_v49, %v282_v51 }
  0xb9   : > { %v285_v55 = vsel %vm281_vm1, %v279_v50, %v283_v52  ;;  %v286_v56 = vadd.f32 1.0, %v284_v53 }
  0xba   : > { %v287_v58 = vadd.f32 1.0, %v285_v55 }
  0xbb   : > { %v288_v60 = vmul.f32 %v286_v56, %v236_v54 }
  0xbc   : > { %v289_v62 = vmul.f32 %v287_v58, %v237_v57 }
  0xbd   : > { %v292_v63 = vadd.f32 %v290_v59, %v288_v60 }
  0xbe   : > { %v293_v0 = vadd.f32 %v291_v61, %v289_v62 }
  0xbf   : > { %v295_v1 = vmul.f32 0.7072136, %v292_v63 }
  0xc0   : > { %v296_v2 = vmul.f32 0.7072136, %v293_v0 }
  0xc1   : > { %297 = vst [vmem:[%s217_s30] sm:$0xff] %v295_v1 }
  0xc2   : > { %298 = vst [vmem:[%s217_s30 + $0x8] sm:$0xff] %v296_v2 }
  0xc3 PF: > { %s14_s15 = sadd.s32 1, %s406_s15  }
  0xc4   : > { %p11_p4 = scmp.ge.s32.totalorder %s14_s15, 4  }
  0xc6   :  { %13 = sbr.rel (!%p11_p4) target bundleno = 1 (0x1), region = 69 }

// kernel: _lambda_.3
= control target key start
LH: loop header
LB: loop body
LE: loop exit
PB: predicated region body
PF: predicated region fallthrough
CT: control target
= control target key end

     0   :  { %s776_s18 = smov 0   ;;  %s895_s0 = inlined_call_operand.vmem [shape: f32[2,4,256], index: 0, kind: input, shape index: {}]   ;;  %s896_s1 = inlined_call_operand.vmem [shape: f32[8,72], index: 1, kind: input, shape index: {}]   ;;  %s897_s2 = inlined_call_operand.vmem [shape: f32[8,1], index: 2, kind: input, shape index: {}]   ;;  %s898_s3 = inlined_call_operand.vmem [shape: f32[2,8,256], index: 3, kind: output, shape index: {0}]   ;;  %s899_s4 = inlined_call_operand.vmem [shape: f32[2,8,1], index: 4, kind: output, shape index: {1}]   ;;  %s900_s5 = inlined_call_operand.vmem [shape: f32[2,8,1], index: 5, kind: output, shape index: {2}]  }
   0x1 LB: > { %s616_s19 = sadd.s32 4294967295, %s732_s18   ;;  %p620_p0 = scmp.ge.s32.totalorder %s732_s18, 1  ;;  %s732_s18 = sphi %s776_s18, %s16_s18  }
   0x2   : > { %p192_p1 = scmp.lt.s32.totalorder %s732_s18, 3 }
   0x4   : > { %p193_p2 = pnand %p620_p0, %p192_p1 }
   0x5   : > { %p228_p3 = scmp.lt.s32.totalorder (!%p193_p2), %s616_s19, 1  ;;  %vm248_vm0 = vcmask (!%p193_p2), 277504   ;;  %v734_v0 = vmov (!%p193_p2), 0.0   ;;  %s735_s24 = smov (!%p193_p2), 17   ;;  %vm262_vm1 = vcmask (!%p193_p2), 1043592   ;;  %vm257_vm2 = vcmask (!%p193_p2), 138240  }
   0x6   : > { %196 = sbr.rel (%p193_p2) target bundleno = 653 (0x28d), region = 32  ;;  %246 = vst [vmem:[#allocation2] sm:$0xff] (!%p193_p2), %v734_v0  ;;  %247 = vst [vmem:[#allocation2 + $0x8] sm:$0xff] (!%p193_p2), %v734_v0  ;;  %479 = vmatprep.mubr.f32.mxu0 (!%p193_p2), %v734_v0  ;;  %vm265_vm3 = vcmask (!%p193_p2), 134144   ;;  %s736_s25 = smov (!%p193_p2), 127   ;;  %v744_v10 = vmov (!%p193_p2), 0   ;;  %v267_v12 = vlaneseq (!%p193_p2) }
   0x7   : > { %249 = vst.msk [vmem:[#allocation2 + $0x10] sm:$0xff] (!%p193_p2), %vm248_vm0, %v734_v0  ;;  %s737_s26 = smov (!%p193_p2), 126   ;;  %s738_s27 = smov (!%p193_p2), 112   ;;  %723 = vset.pattern.permute.xlu1 (!%p193_p2), %v744_v10  ;;  %724 = vset.pattern.permute.xlu0 (!%p193_p2), %v744_v10  ;;  %v405_v11 = vld [vmem:[%s897_s2] sm:$0xff] (!%p193_p2)  ;;  %vm377_vm5 = vcmask (!%p193_p2), 1039360   ;;  %vm312_vm7 = vcmask (!%p193_p2), 1031168  }
   0x8   : > { %s739_s28 = smov (!%p193_p2), 110   ;;  %s740_s29 = smov (!%p193_p2), 111   ;;  %v268_v15 = vand.u32 (!%p193_p2), 127, %v267_v12  ;;  %vm745_vm8 = vmmov (!%p193_p2), 1   ;;  %vm325_vm10 = vcmask (!%p193_p2), 916480   ;;  %vm338_vm14 = vcmask (!%p193_p2), 900096  }
   0x9   : > { %s741_s30 = smov (!%p193_p2), 96   ;;  %s742_s6 = smov (!%p193_p2), 94   ;;  %vm388_vm0 = vcmask (!%p193_p2), 908288  }
   0xa   : > { %s743_s7 = smov (!%p193_p2), 95   ;;  %v269_v18 = vadd.s32 (!%p193_p2), 128, %v268_v15  ;;  %v274_v22 = vand.u32 (!%p193_p2), 15, %v268_v15 }
   0xc   : > { %v281_v21 = vand.u32 (!%p193_p2), 15, %v269_v18  ;;  %vm816_vm6 = vcmp.ne.s32.totalorder (!%p193_p2), %v274_v22, 0  ;;  %vm840_vm13 = vcmp.ne.s32.totalorder (!%p193_p2), %v274_v22, 15 }
   0xd   : > { %s914_s19 = smov (!%p228_p3, %s616_s19), 1  ;;  %vm836_vm12 = vmpackc.low %vm745_vm8, %vm816_vm6 }
   0xe   : > { %s787_s20 = sshll.u32 %s914_s19, 3  ;;  %vm812_vm4 = vcmp.ne.s32.totalorder %v281_v21, 0  ;;  %vm827_vm11 = vcmp.ne.s32.totalorder %v281_v21, 15  ;;  %s643_s12 = sshll.u32 %s914_s19, 4 }
   0xf   : > { %s232_s23 = scalar_lea.vmem %s895_s0, %s787_s20  ;;  %vm823_vm9 = vmpackc.low %vm745_vm8, %vm812_vm4  ;;  %s237_s15 = scalar_lea.vmem %s898_s3, %s643_s12 }
  0x10   : > { %v250_v1 = vld [vmem:[%s232_s23] sm:$0xff]  ;;  %vm651_vm15 = vmpackc.low %vm812_vm4, %vm827_vm11  ;;  %vm351_vm4 = vcmask 785408   ;;  %s241_s19 = scalar_lea.vmem %s899_s4, %s787_s20  ;;  %s245_s23 = scalar_lea.vmem %s900_s5, %s787_s20 }
  0x11   : > { %253 = vrot.lane.b32.xlu0 %v250_v1, %s735_s24  ;;  %v252_v2 = vcombine.high %v250_v1, %v250_v1 }
  0x15   : > { %255 = vrot.lane.b32.xlu0 %v252_v2, %s735_s24 }
  0x83   : > { %v254_v3 = vpop.permute.xlu0 %253 }
  0x84   : > { %263 = vst.msk [vmem:[#allocation2] sm:$0xf] %vm262_vm1, %v254_v3  ;;  %vm654_vm1 = vmpackc.low %vm816_vm6, %vm840_vm13  ;;  %vm364_vm6 = vcmask 769024  }
  0x87   : > { %v256_v4 = vpop.permute.xlu0 %255 }
  0x88   : > { %v258_v5 = vsel %vm257_vm2, %v254_v3, %v256_v4  ;;  %266 = vst.msk [vmem:[#allocation2 + $0x10] sm:$0xf] %vm265_vm3, %v256_v4  ;;  %vm657_vm2 = vmpackc.low %vm827_vm11, %vm745_vm8 }
  0x89   : > { %264 = vst [vmem:[#allocation2 + $0x8] sm:$0xf] %v258_v5  ;;  %vm660_vm3 = vmpackc.low %vm840_vm13, %vm745_vm8  ;;  %vm491_vm8 = vcmask 7168  }
  0x8b   : > { %v793_v6 = vld [vmem:[#allocation2] sm:$0xff] }
  0x8c   : > { %371 = vrot.lane.b32.xlu1 %v793_v6, %s736_s25  ;;  %306 = vrot.lane.b32.xlu0 %v793_v6, %s737_s26 }
  0x8f   : > { %v302_v8 = vld [vmem:[#allocation2 + $0x10] sm:$0xff] }
  0x90   : > { %319 = vrot.lane.b32.xlu1 %v793_v6, %s738_s27  ;;  %332 = vrot.lane.b32.xlu0 %v793_v6, %s739_s28  ;;  %v799_v7 = vld [vmem:[#allocation2 + $0x8] sm:$0xff] }
  0x91   : > { %v693_v9 = vpack.i.bf16 %v302_v8, %v799_v7 }
  0x94   : > { %382 = vrot.lane.b32.xlu1 %v793_v6, %s740_s29  ;;  %345 = vrot.lane.b32.xlu0 %v793_v6, %s741_s30 }
  0x98   : > { %694 = vrot.lane.b32.xlu0 %v693_v9, %s737_s26  ;;  %689 = vrot.lane.b32.xlu1 %v693_v9, %s736_s25 }
  0x9c   : > { %704 = vrot.lane.b32.xlu0 %v693_v9, %s739_s28  ;;  %699 = vrot.lane.b32.xlu1 %v693_v9, %s738_s27 }
  0xa0   : > { %714 = vrot.lane.b32.xlu0 %v693_v9, %s741_s30  ;;  %709 = vrot.lane.b32.xlu1 %v693_v9, %s740_s29 }
  0xa4   : > { %360 = vrot.lane.b32.xlu0 %v799_v7, %s742_s6  ;;  %719 = vrot.lane.b32.xlu1 %v693_v9, %s743_s7 }
  0xa8   : > { %358 = vrot.lane.b32.xlu0 %v793_v6, %s742_s6  ;;  %393 = vrot.lane.b32.xlu1 %v793_v6, %s743_s7 }
  0xac   : > { %362 = vrot.lane.b32.xlu1 %v302_v8, %s742_s6 }
  0xb0   : > { %408 = vperm.xlu1 %723, %v405_v11  }
  0xfe   : > { %v372_v13 = vpop.permute.xlu1 %371  ;;  %v307_v14 = vpop.permute.xlu0 %306 }
 0x102   : > { %v320_v16 = vpop.permute.xlu1 %319  ;;  %v333_v17 = vpop.permute.xlu0 %332 }
 0x106   : > { %v383_v19 = vpop.permute.xlu1 %382  ;;  %v810_v20 = vpop.permute.xlu0 %345 }
 0x10a   : > { %v690_v23 = vpop.permute.xlu1 %689  ;;  %v695_v24 = vpop.permute.xlu0 %694 }
 0x10b   : > { %v692_v26 = vunpack.i.h.bf16 %v690_v23  ;;  %v691_v27 = vunpack.i.l.bf16 %v690_v23  ;;  %v697_v29 = vunpack.i.h.bf16 %v695_v24  ;;  %v696_v30 = vunpack.i.l.bf16 %v695_v24 }
 0x10d   : > { %v379_v31 = vsel %vm377_vm5, %v691_v27, %v692_v26  ;;  %v378_v33 = vsel %vm377_vm5, %v372_v13, %v691_v27  ;;  %v313_v45 = vsel %vm312_vm7, %v307_v14, %v696_v30  ;;  %v314_v46 = vsel %vm312_vm7, %v696_v30, %v697_v29  ;;  %v404_v13 = vld [vmem:[%s896_s1] sm:$0xff] }
 0x10e   : > { %v700_v34 = vpop.permute.xlu1 %699  ;;  %v705_v35 = vpop.permute.xlu0 %704  ;;  %v644_v37 = vpack.c.bf16 %v379_v31, %v799_v7  ;;  %v647_v38 = vpack.c.bf16 %v378_v33, %v793_v6  ;;  %vm399_vm5 = vcmask 777216   ;;  %vm411_vm7 = vcmask 588800  }
 0x10f   : > { %v702_v40 = vunpack.i.h.bf16 %v700_v34  ;;  %v701_v41 = vunpack.i.l.bf16 %v700_v34  ;;  %v707_v43 = vunpack.i.h.bf16 %v705_v35  ;;  %v706_v44 = vunpack.i.l.bf16 %v705_v35 }
 0x110   : > { %646 = vmatprep.subr.msk.bf16.mxu0 %vm823_vm9, %v644_v37 }
 0x111   : > { %v326_v47 = vsel %vm325_vm10, %v320_v16, %v701_v41  ;;  %v327_v48 = vsel %vm325_vm10, %v701_v41, %v702_v40  ;;  %649 = vmatpush1.bf16.msk.msra.mxu0 %vm836_vm12, %v647_v38  ;;  %v339_v55 = vsel %vm338_vm14, %v333_v17, %v706_v44  ;;  %v340_v56 = vsel %vm338_vm14, %v706_v44, %v707_v43 }
 0x112   : > { %v650_v49 = vpack.c.bf16 %v327_v48, %v314_v46  ;;  %v653_v50 = vpack.c.bf16 %v326_v47, %v313_v45  ;;  %v710_v51 = vpop.permute.xlu1 %709  ;;  %v715_v52 = vpop.permute.xlu0 %714 }
 0x113   : > { %v712_v53 = vunpack.i.h.bf16 %v710_v51  ;;  %v711_v54 = vunpack.i.l.bf16 %v710_v51  ;;  %v717_v59 = vunpack.i.h.bf16 %v715_v52  ;;  %v716_v60 = vunpack.i.l.bf16 %v715_v52 }
 0x114   : > { %652 = vmatprep.subr.msk.bf16.mxu0 %vm651_vm15, %v650_v49 }
 0x115   : > { %v389_v57 = vsel %vm388_vm0, %v383_v19, %v711_v54  ;;  %v390_v58 = vsel %vm388_vm0, %v711_v54, %v712_v53  ;;  %655 = vmatpush1.bf16.msk.msra.mxu0 %vm654_vm1, %v653_v50  ;;  %v353_v3 = vsel %vm351_vm4, %v716_v60, %v717_v59  ;;  %v352_v7 = vsel %vm351_vm4, %v810_v20, %v716_v60 }
 0x116   : > { %v656_v61 = vpack.c.bf16 %v340_v56, %v390_v58  ;;  %v659_v62 = vpack.c.bf16 %v339_v55, %v389_v57  ;;  %v720_v63 = vpop.permute.xlu1 %719  ;;  %v361_v2 = vpop.permute.xlu0 %360 }
 0x117   : > { %v722_v0 = vunpack.i.h.bf16 %v720_v63  ;;  %v721_v1 = vunpack.i.l.bf16 %v720_v63 }
 0x118   : > { %658 = vmatprep.subr.msk.bf16.mxu0 %vm657_vm2, %v656_v61 }
 0x119   : > { %661 = vmatpush1.bf16.msk.msra.mxu0 %vm660_vm3, %v659_v62  ;;  %v401_v4 = vsel %vm399_vm5, %v721_v1, %v722_v0 }
 0x11a   : > { %v394_v5 = vpop.permute.xlu1 %393  ;;  %v662_v6 = vpack.c.bf16 %v401_v4, %v353_v3  ;;  %v359_v10 = vpop.permute.xlu0 %358 }
 0x11b   : > { %v400_v8 = vsel %vm399_vm5, %v394_v5, %v721_v1  ;;  %v365_v14 = vsel %vm364_vm6, %v359_v10, %v361_v2 }
 0x11c   : > { %v665_v9 = vpack.c.bf16 %v400_v8, %v352_v7  ;;  %664 = vmatprep.subr.msk.bf16.mxu0 %vm823_vm9, %v662_v6 }
 0x11e   : > { %v363_v11 = vpop.permute.xlu1 %362  ;;  %667 = vmatpush1.bf16.msk.msra.mxu0 %vm836_vm12, %v665_v9 }
 0x11f   : > { %v366_v12 = vsel %vm364_vm6, %v361_v2, %v363_v11 }
 0x120   : > { %637 = vmatprep.subr.msk.mxu0 %vm827_vm11, %v366_v12 }
 0x122   : > { %638 = vmatpush1.msk.msra.mxu0 %vm840_vm13, %v365_v14 }
 0x123   : > { %639 = vmatmul.mubr.msk.f32.vlgmr.msra.gmra.mrb[0].mxu0 %vm411_vm7, %v404_v13 }
 0x12f   : > { %v409_v15 = vpop.permute.xlu1 %408 }
 0x1f6   : > { %v481_v16 = vpop.f32.mrb[0].mxu0 }
 0x1f7   : > { %v482_v17 = vadd.f32 %v481_v16, %v409_v15  ;;  %v483_v18 = vpop.f32.mrb[1].mxu0 }
 0x1f8   : > { %v484_v19 = vadd.f32 %v483_v18, %v409_v15 }
 0x1f9   : > { %486 = vst [vmem:[%s237_s15] sm:$0xff] %v482_v17  ;;  %v493_v20 = vmul.f32 %v482_v17, %v482_v17 }
 0x1fa   : > { %487 = vst [vmem:[%s237_s15 + $0x8] sm:$0xff] %v484_v19  ;;  %v488_v21 = vadd.f32 %v484_v19, %v482_v17  ;;  %v494_v22 = vmul.f32 %v484_v19, %v484_v19 }
 0x1fc   : > { %489 = vadd.xlane.f32.xlu0 %v488_v21  ;;  %v495_v23 = vadd.f32 %v494_v22, %v493_v20 }
 0x1fe   : > { %496 = vadd.xlane.f32.xlu1 %v495_v23 }
 0x289   : > { %v490_v24 = vpop.xlane.xlu0 %489 }
 0x28a   : > { %492 = vst.msk [vmem:[%s241_s19] sm:$0xff] %vm491_vm8, %v490_v24 }
 0x28b   : > { %v497_v25 = vpop.xlane.xlu1 %496 }
 0x28c   : > { %498 = vst.msk [vmem:[%s245_s23] sm:$0xff] %vm491_vm8, %v497_v25 }
 0x28d PF: > { %s16_s18 = sadd.s32 1, %s732_s18  }
 0x28e   : > { %p13_p4 = scmp.ge.s32.totalorder %s16_s18, 4  }
 0x290   :  { %15 = sbr.rel (!%p13_p4) target bundleno = 1 (0x1), region = 86 }

// kernel: _lambda_.4
= control target key start
LH: loop header
LB: loop body
LE: loop exit
PB: predicated region body
PF: predicated region fallthrough
CT: control target
= control target key end

     0   :  { %s999_s27 = smov 0   ;;  %s1127_s0 = inlined_call_operand.vmem [shape: f32[2,8,256], index: 0, kind: input, shape index: {}]   ;;  %s1128_s1 = inlined_call_operand.vmem [shape: f32[8,1], index: 1, kind: input, shape index: {}]   ;;  %s1129_s2 = inlined_call_operand.vmem [shape: f32[8,1], index: 2, kind: input, shape index: {}]   ;;  %s1130_s3 = inlined_call_operand.vmem [shape: f32[8,72], index: 3, kind: input, shape index: {}]   ;;  %s1131_s4 = inlined_call_operand.vmem [shape: f32[8,1], index: 4, kind: input, shape index: {}]   ;;  %s1132_s5 = inlined_call_operand.vmem [shape: f32[2,8,256], index: 5, kind: output, shape index: {0}]   ;;  %s1133_s6 = inlined_call_operand.vmem [shape: f32[2,8,256], index: 6, kind: output, shape index: {1}]   ;;  %s1134_s7 = inlined_call_operand.vmem [shape: f32[2,8,1], index: 7, kind: output, shape index: {2}]   ;;  %s1135_s8 = inlined_call_operand.vmem [shape: f32[2,8,1], index: 8, kind: output, shape index: {3}]  }
   0x1 LB: > { %s814_s28 = sadd.s32 4294967295, %s940_s27   ;;  %p818_p0 = scmp.ge.s32.totalorder %s940_s27, 1  ;;  %s940_s27 = sphi %s999_s27, %s19_s27  }
   0x2   : > { %p269_p1 = scmp.lt.s32.totalorder %s940_s27, 3 }
   0x4   : > { %p270_p2 = pnand %p818_p0, %p269_p1 }
   0x5   : > { %v341_v0 = vld [vmem:[%s1128_s1] sm:$0xff] (!%p270_p2)  ;;  %v942_v1 = vmov (!%p270_p2), 0   ;;  %v943_v3 = vmov (!%p270_p2), 0.0   ;;  %p316_p3 = scmp.lt.s32.totalorder (!%p270_p2), %s814_s28, 1  ;;  %vm415_vm0 = vcmask (!%p270_p2), 277504   ;;  %s944_s18 = smov (!%p270_p2), 17  }
   0x6   : > { %273 = sbr.rel (%p270_p2) target bundleno = 824 (0x338), region = 40  ;;  %889 = vset.pattern.permute.xlu0 (!%p270_p2), %v942_v1  ;;  %925 = vset.pattern.permute.xlu1 (!%p270_p2), %v942_v1  ;;  %v349_v2 = vld [vmem:[%s1129_s2] sm:$0xff] (!%p270_p2)  ;;  %413 = vst [vmem:[#allocation2] sm:$0xff] (!%p270_p2), %v943_v3  ;;  %416 = vst.msk [vmem:[#allocation2 + $0x10] sm:$0xff] (!%p270_p2), %vm415_vm0, %v943_v3  ;;  %vm428_vm3 = vcmask (!%p270_p2), 1047688   ;;  %vm423_vm4 = vcmask (!%p270_p2), 138240  }
   0x7   : > { %344 = vperm.xlu0 (!%p270_p2), %889, %v341_v0   ;;  %644 = vmatprep.mubr.f32.mxu0 (!%p270_p2), %v943_v3  ;;  %s945_s19 = smov (!%p270_p2), 126   ;;  %s946_s20 = smov (!%p270_p2), 127   ;;  %vm542_vm6 = vcmask (!%p270_p2), 1039360   ;;  %vm490_vm8 = vcmask (!%p270_p2), 916480   ;;  %vm953_vm9 = vmmov (!%p270_p2), 1   ;;  %vm477_vm11 = vcmask (!%p270_p2), 1031168  }
   0x8   : > { %s947_s21 = smov (!%p270_p2), 110   ;;  %s948_s22 = smov (!%p270_p2), 112   ;;  %vm553_vm15 = vcmask (!%p270_p2), 908288  }
   0x9   : > { %s949_s23 = smov (!%p270_p2), 96   ;;  %s950_s24 = smov (!%p270_p2), 111  }
   0xa   : > { %s951_s25 = smov (!%p270_p2), 95   ;;  %s952_s26 = smov (!%p270_p2), 94  }
   0xb   : > { %352 = vperm.xlu0 (!%p270_p2), %889, %v349_v2  }
   0xd   : > { %s1149_s28 = smov (!%p316_p3, %s814_s28), 1 }
   0xe   : > { %s1016_s11 = sshll.u32 %s1149_s28, 4  ;;  %s825_s15 = sshll.u32 %s1149_s28, 3 }
   0xf   : > { %s320_s14 = scalar_lea.vmem %s1127_s0, %s1016_s11  ;;  %s325_s17 = scalar_lea.vmem %s1132_s5, %s1016_s11 }
  0x10   : > { %v339_v5 = vld [vmem:[%s320_s14] sm:$0xff]  ;;  %v340_v6 = vld [vmem:[%s320_s14 + $0x8] sm:$0xff]  ;;  %s330_s14 = scalar_lea.vmem %s1133_s6, %s1016_s11 }
  0x86   : > { %v345_v4 = vpop.permute.xlu0 %344 }
  0x87   : > { %v347_v7 = vmul.f32 %v345_v4, %v339_v5  ;;  %v348_v8 = vmul.f32 %v345_v4, %v340_v6  ;;  %v570_v4 = vld [vmem:[%s1131_s4] sm:$0xff]  ;;  %v432_v5 = vlaneseq }
  0x8a   : > { %v353_v9 = vpop.permute.xlu0 %352 }
  0x8b   : > { %v355_v10 = vadd.f32 %v353_v9, %v347_v7  ;;  %v356_v11 = vadd.f32 %v353_v9, %v348_v8  ;;  %v433_v8 = vand.u32 127, %v432_v5 }
  0x8d   : > { %v359_v12 = vmul.f32 0.70710677, %v355_v10  ;;  %v360_v13 = vmul.f32 0.70710677, %v356_v11  ;;  %v357_v55 = vmul.f32 0.5, %v355_v10  ;;  %v358_v58 = vmul.f32 0.5, %v356_v11 }
  0x8e   : > { %v434_v11 = vadd.s32 128, %v433_v8 }
  0x8f   : > { %v361_v14 = vand.u32 2147483647, %v359_v12  ;;  %v362_v15 = vand.u32 2147483647, %v360_v13  ;;  %vm401_vm1 = vcmp.ge.f32.partialorder %v359_v12, 0.0  ;;  %vm402_vm2 = vcmp.ge.f32.partialorder %v360_v13, 0.0 }
  0x91   : > { %v363_v16 = vmul.f32 0.3275911, %v361_v14  ;;  %v364_v17 = vmul.f32 0.3275911, %v362_v15  ;;  %v389_v20 = vsub.f32 0.0, %v361_v14  ;;  %v390_v21 = vsub.f32 0.0, %v362_v15 }
  0x93   : > { %v365_v18 = vadd.f32 1.0, %v363_v16  ;;  %v366_v19 = vadd.f32 1.0, %v364_v17  ;;  %v391_v23 = vmul.f32 %v389_v20, %v361_v14  ;;  %v392_v25 = vmul.f32 %v390_v21, %v362_v15 }
  0x94   : > { %v446_v14 = vand.u32 15, %v434_v11  ;;  %v439_v15 = vand.u32 15, %v433_v8 }
  0x95   : > { %926 = vrcp.f32 %v365_v18  ;;  %v393_v29 = vmul.f32 1.442695, %v391_v23  ;;  %v395_v31 = vmul.f32 1.442695, %v392_v25 }
  0x96   : > { %928 = vrcp.f32 %v366_v19  ;;  %vm1045_vm5 = vcmp.ne.s32.totalorder %v446_v14, 0  ;;  %vm1049_vm7 = vcmp.ne.s32.totalorder %v439_v15, 0  ;;  %vm1060_vm12 = vcmp.ne.s32.totalorder %v446_v14, 15 }
  0x97   : > { %930 = vpow2.f32 %v393_v29  ;;  %vm1056_vm10 = vmpackc.low %vm953_vm9, %vm1045_vm5  ;;  %vm1073_vm14 = vcmp.ne.s32.totalorder %v439_v15, 15 }
  0x98   : > { %932 = vpow2.f32 %v395_v31  ;;  %vm1069_vm13 = vmpackc.low %vm953_vm9, %vm1049_vm7 }
  0x99   : > { %vm852_vm0 = vmpackc.low %vm1045_vm5, %vm1060_vm12  ;;  %vm564_vm5 = vcmask 777216  }
  0x9f   : > { %v927_v22 = vpop.eup %926 }
  0xa0   : > { %v929_v24 = vpop.eup %928  ;;  %v371_v26 = vmul.f32 1.0614054, %v927_v22 }
  0xa1   : > { %v372_v27 = vmul.f32 1.0614054, %v929_v24  ;;  %v931_v45 = vpop.eup %930 }
  0xa2   : > { %v373_v28 = vadd.f32 -1.4531521, %v371_v26  ;;  %v933_v47 = vpop.eup %932 }
  0xa3   : > { %v374_v30 = vadd.f32 -1.4531521, %v372_v27 }
  0xa4   : > { %v375_v32 = vmul.f32 %v927_v22, %v373_v28 }
  0xa5   : > { %v376_v33 = vmul.f32 %v929_v24, %v374_v30 }
  0xa6   : > { %v377_v34 = vadd.f32 1.4214138, %v375_v32 }
  0xa7   : > { %v378_v35 = vadd.f32 1.4214138, %v376_v33 }
  0xa8   : > { %v379_v36 = vmul.f32 %v927_v22, %v377_v34 }
  0xa9   : > { %v380_v37 = vmul.f32 %v929_v24, %v378_v35 }
  0xaa   : > { %v381_v38 = vadd.f32 -0.28449672, %v379_v36 }
  0xab   : > { %v382_v39 = vadd.f32 -0.28449672, %v380_v37 }
  0xac   : > { %v383_v40 = vmul.f32 %v927_v22, %v381_v38 }
  0xad   : > { %v384_v41 = vmul.f32 %v929_v24, %v382_v39 }
  0xae   : > { %v385_v42 = vadd.f32 0.2548296, %v383_v40 }
  0xaf   : > { %v386_v43 = vadd.f32 0.2548296, %v384_v41 }
  0xb0   : > { %v387_v44 = vmul.f32 %v927_v22, %v385_v42 }
  0xb1   : > { %v388_v46 = vmul.f32 %v929_v24, %v386_v43 }
  0xb2   : > { %v397_v48 = vmul.f32 %v931_v45, %v387_v44 }
  0xb3   : > { %v398_v49 = vmul.f32 %v933_v47, %v388_v46 }
  0xb4   : > { %v399_v50 = vsub.f32 1.0, %v397_v48 }
  0xb5   : > { %v400_v51 = vsub.f32 1.0, %v398_v49 }
  0xb6   : > { %v403_v52 = vsub.f32 0.0, %v399_v50 }
  0xb7   : > { %v404_v53 = vsub.f32 0.0, %v400_v51 }
  0xb8   : > { %v405_v54 = vsel %vm401_vm1, %v399_v50, %v403_v52  ;;  %vm503_vm1 = vcmask 900096  }
  0xb9   : > { %v407_v56 = vadd.f32 1.0, %v405_v54  ;;  %v406_v57 = vsel %vm402_vm2, %v400_v51, %v404_v53  ;;  %vm855_vm2 = vmpackc.low %vm1049_vm7, %vm1073_vm14  ;;  %vm529_vm7 = vcmask 769024  }
  0xba   : > { %v408_v59 = vadd.f32 1.0, %v406_v57 }
  0xbb   : > { %v409_v60 = vmul.f32 %v407_v56, %v357_v55 }
  0xbc   : > { %v410_v61 = vmul.f32 %v408_v59, %v358_v58 }
  0xbd   : > { %419 = vrot.lane.b32.xlu1 %v409_v60, %s944_s18  ;;  %411 = vst [vmem:[%s325_s17] sm:$0xff] %v409_v60 }
  0xbe   : > { %412 = vst [vmem:[%s325_s17 + $0x8] sm:$0xff] %v410_v61 }
  0xc1   : > { %421 = vrot.lane.b32.xlu1 %v410_v61, %s944_s18  ;;  %s334_s18 = scalar_lea.vmem %s1134_s7, %s825_s15 }
 0x12f   : > { %v420_v62 = vpop.permute.xlu1 %419 }
 0x130   : > { %429 = vst.msk [vmem:[#allocation2] sm:$0xff] %vm428_vm3, %v420_v62  ;;  %vm858_vm3 = vmpackc.low %vm1060_vm12, %vm953_vm9 }
 0x133   : > { %v422_v63 = vpop.permute.xlu1 %421 }
 0x134   : > { %v1026_v0 = vsel %vm423_vm4, %v420_v62, %v422_v63  ;;  %431 = vst.msk [vmem:[#allocation2 + $0x10] sm:$0xff] %vm423_vm4, %v422_v63  ;;  %vm516_vm4 = vcmask 785408  }
 0x137   : > { %v1028_v1 = vld [vmem:[#allocation2] sm:$0xff] }
 0x138   : > { %471 = vrot.lane.b32.xlu0 %v1028_v1, %s945_s19  ;;  %536 = vrot.lane.b32.xlu1 %v1028_v1, %s946_s20 }
 0x13b   : > { %v467_v2 = vld [vmem:[#allocation2 + $0x10] sm:$0xff] }
 0x13c   : > { %497 = vrot.lane.b32.xlu0 %v1028_v1, %s947_s21  ;;  %484 = vrot.lane.b32.xlu1 %v1028_v1, %s948_s22  ;;  %v900_v3 = vpack.i.bf16 %v467_v2, %v1026_v0 }
 0x140   : > { %510 = vrot.lane.b32.xlu0 %v1028_v1, %s949_s23  ;;  %547 = vrot.lane.b32.xlu1 %v1028_v1, %s950_s24 }
 0x144   : > { %901 = vrot.lane.b32.xlu1 %v900_v3, %s948_s22  ;;  %891 = vrot.lane.b32.xlu0 %v900_v3, %s946_s20  ;;  %s338_s20 = scalar_lea.vmem %s1135_s8, %s825_s15 }
 0x148   : > { %911 = vrot.lane.b32.xlu1 %v900_v3, %s950_s24  ;;  %896 = vrot.lane.b32.xlu0 %v900_v3, %s945_s19 }
 0x14c   : > { %921 = vrot.lane.b32.xlu1 %v900_v3, %s951_s25  ;;  %906 = vrot.lane.b32.xlu0 %v900_v3, %s947_s21 }
 0x150   : > { %558 = vrot.lane.b32.xlu1 %v1028_v1, %s951_s25  ;;  %916 = vrot.lane.b32.xlu0 %v900_v3, %s949_s23 }
 0x154   : > { %527 = vrot.lane.b32.xlu1 %v467_v2, %s952_s26  ;;  %525 = vrot.lane.b32.xlu0 %v1026_v0, %s952_s26 }
 0x158   : > { %523 = vrot.lane.b32.xlu0 %v1028_v1, %s952_s26  ;;  %573 = vperm.xlu1 %925, %v570_v4  }
 0x1aa   : > { %v472_v6 = vpop.permute.xlu0 %471  ;;  %v537_v7 = vpop.permute.xlu1 %536 }
 0x1ae   : > { %v498_v9 = vpop.permute.xlu0 %497  ;;  %v485_v10 = vpop.permute.xlu1 %484 }
 0x1b2   : > { %v1043_v12 = vpop.permute.xlu0 %510  ;;  %v548_v13 = vpop.permute.xlu1 %547 }
 0x1b6   : > { %v892_v16 = vpop.permute.xlu0 %891  ;;  %v902_v17 = vpop.permute.xlu1 %901 }
 0x1b7   : > { %v894_v19 = vunpack.i.h.bf16 %v892_v16  ;;  %v893_v20 = vunpack.i.l.bf16 %v892_v16  ;;  %v904_v22 = vunpack.i.h.bf16 %v902_v17  ;;  %v903_v23 = vunpack.i.l.bf16 %v902_v17 }
 0x1b9   : > { %v544_v24 = vsel %vm542_vm6, %v893_v20, %v894_v19  ;;  %v543_v26 = vsel %vm542_vm6, %v537_v7, %v893_v20  ;;  %v491_v38 = vsel %vm490_vm8, %v485_v10, %v903_v23  ;;  %v492_v39 = vsel %vm490_vm8, %v903_v23, %v904_v22  ;;  %vm861_vm6 = vmpackc.low %vm1073_vm14, %vm953_vm9  ;;  %v569_v7 = vld [vmem:[%s1130_s3] sm:$0xff] }
 0x1ba   : > { %v897_v27 = vpop.permute.xlu0 %896  ;;  %v912_v28 = vpop.permute.xlu1 %911  ;;  %v845_v30 = vpack.c.bf16 %v544_v24, %v1026_v0  ;;  %v848_v31 = vpack.c.bf16 %v543_v26, %v1028_v1  ;;  %vm576_vm8 = vcmask 588800   ;;  %vm656_vm9 = vcmask 7168  }
 0x1bb   : > { %v899_v33 = vunpack.i.h.bf16 %v897_v27  ;;  %v898_v34 = vunpack.i.l.bf16 %v897_v27  ;;  %v914_v36 = vunpack.i.h.bf16 %v912_v28  ;;  %v913_v37 = vunpack.i.l.bf16 %v912_v28 }
 0x1bc   : > { %847 = vmatprep.subr.msk.bf16.mxu0 %vm1056_vm10, %v845_v30 }
 0x1bd   : > { %v478_v40 = vsel %vm477_vm11, %v472_v6, %v898_v34  ;;  %v479_v41 = vsel %vm477_vm11, %v898_v34, %v899_v33  ;;  %850 = vmatpush1.bf16.msk.msra.mxu0 %vm1069_vm13, %v848_v31  ;;  %v554_v48 = vsel %vm553_vm15, %v548_v13, %v913_v37  ;;  %v555_v49 = vsel %vm553_vm15, %v913_v37, %v914_v36 }
 0x1be   : > { %v851_v42 = vpack.c.bf16 %v492_v39, %v479_v41  ;;  %v854_v43 = vpack.c.bf16 %v491_v38, %v478_v40  ;;  %v907_v44 = vpop.permute.xlu0 %906  ;;  %v922_v45 = vpop.permute.xlu1 %921 }
 0x1bf   : > { %v909_v46 = vunpack.i.h.bf16 %v907_v44  ;;  %v908_v47 = vunpack.i.l.bf16 %v907_v44  ;;  %v924_v52 = vunpack.i.h.bf16 %v922_v45  ;;  %v923_v53 = vunpack.i.l.bf16 %v922_v45 }
 0x1c0   : > { %853 = vmatprep.subr.msk.bf16.mxu0 %vm852_vm0, %v851_v42 }
 0x1c1   : > { %v504_v50 = vsel %vm503_vm1, %v498_v9, %v908_v47  ;;  %v505_v51 = vsel %vm503_vm1, %v908_v47, %v909_v46  ;;  %856 = vmatpush1.bf16.msk.msra.mxu0 %vm855_vm2, %v854_v43  ;;  %v566_v63 = vsel %vm564_vm5, %v923_v53, %v924_v52 }
 0x1c2   : > { %v857_v54 = vpack.c.bf16 %v505_v51, %v555_v49  ;;  %v860_v55 = vpack.c.bf16 %v504_v50, %v554_v48  ;;  %v917_v56 = vpop.permute.xlu0 %916  ;;  %v559_v57 = vpop.permute.xlu1 %558 }
 0x1c3   : > { %v919_v58 = vunpack.i.h.bf16 %v917_v56  ;;  %v918_v59 = vunpack.i.l.bf16 %v917_v56  ;;  %v565_v62 = vsel %vm564_vm5, %v559_v57, %v923_v53 }
 0x1c4   : > { %859 = vmatprep.subr.msk.bf16.mxu0 %vm858_vm3, %v857_v54 }
 0x1c5   : > { %v517_v60 = vsel %vm516_vm4, %v1043_v12, %v918_v59  ;;  %v518_v61 = vsel %vm516_vm4, %v918_v59, %v919_v58  ;;  %862 = vmatpush1.bf16.msk.msra.mxu0 %vm861_vm6, %v860_v55 }
 0x1c6   : > { %v863_v0 = vpack.c.bf16 %v566_v63, %v518_v61  ;;  %v866_v1 = vpack.c.bf16 %v565_v62, %v517_v60  ;;  %v526_v2 = vpop.permute.xlu0 %525  ;;  %v528_v3 = vpop.permute.xlu1 %527 }
 0x1c7   : > { %v531_v4 = vsel %vm529_vm7, %v526_v2, %v528_v3 }
 0x1c8   : > { %865 = vmatprep.subr.msk.bf16.mxu0 %vm1056_vm10, %v863_v0 }
 0x1c9   : > { %868 = vmatpush1.bf16.msk.msra.mxu0 %vm1069_vm13, %v866_v1 }
 0x1ca   : > { %v524_v5 = vpop.permute.xlu0 %523  ;;  %837 = vmatprep.subr.msk.mxu0 %vm1060_vm12, %v531_v4 }
 0x1cb   : > { %v530_v6 = vsel %vm529_vm7, %v524_v5, %v526_v2 }
 0x1cd   : > { %838 = vmatpush1.msk.msra.mxu0 %vm1073_vm14, %v530_v6 }
 0x1ce   : > { %839 = vmatmul.mubr.msk.f32.vlgmr.msra.gmra.mrb[0].mxu0 %vm576_vm8, %v569_v7 }
 0x1d7   : > { %v574_v8 = vpop.permute.xlu1 %573 }
 0x2a1   : > { %v646_v9 = vpop.f32.mrb[0].mxu0 }
 0x2a2   : > { %v647_v10 = vadd.f32 %v646_v9, %v574_v8  ;;  %v648_v11 = vpop.f32.mrb[1].mxu0 }
 0x2a3   : > { %v649_v12 = vadd.f32 %v648_v11, %v574_v8 }
 0x2a4   : > { %651 = vst [vmem:[%s330_s14] sm:$0xff] %v647_v10  ;;  %v658_v13 = vmul.f32 %v647_v10, %v647_v10 }
 0x2a5   : > { %652 = vst [vmem:[%s330_s14 + $0x8] sm:$0xff] %v649_v12  ;;  %v653_v14 = vadd.f32 %v649_v12, %v647_v10  ;;  %v659_v15 = vmul.f32 %v649_v12, %v649_v12 }
 0x2a7   : > { %654 = vadd.xlane.f32.xlu0 %v653_v14  ;;  %v660_v16 = vadd.f32 %v659_v15, %v658_v13 }
 0x2a9   : > { %661 = vadd.xlane.f32.xlu1 %v660_v16 }
 0x334   : > { %v655_v17 = vpop.xlane.xlu0 %654 }
 0x335   : > { %657 = vst.msk [vmem:[%s334_s18] sm:$0xff] %vm656_vm9, %v655_v17 }
 0x336   : > { %v662_v18 = vpop.xlane.xlu1 %661 }
 0x337   : > { %663 = vst.msk [vmem:[%s338_s20] sm:$0xff] %vm656_vm9, %v662_v18 }
 0x338 PF: > { %s19_s27 = sadd.s32 1, %s940_s27  }
 0x339   : > { %p16_p4 = scmp.ge.s32.totalorder %s19_s27, 4  }
 0x33b   :  { %18 = sbr.rel (!%p16_p4) target bundleno = 1 (0x1), region = 106 }

</bundles_post_ra>
